<compile_context>
chip_gen: v6e
topology: v6e:2x2x1
jax: 0.10.0
libtpu: 0.0.40
codegen_flags: <defaults>
</compile_context>

<pallas_src>
import math
from functools import partial

import jax
import jax.numpy as jnp
from jax import lax
from jax.experimental import pallas as pl
from jax.experimental.pallas import tpu as pltpu

LN_EPS = 1e-12                   # BERT layer-norm epsilon
MATMUL_DTYPE = jnp.bfloat16      # MXU-native on v5e / v6e / v7x
ACT_DTYPE = jnp.bfloat16         # residual-stream / activation storage dtype
VMEM_BUDGET = 48 * 1024 * 1024   # stay below v7x's 64 MiB physical VMEM


def _pick_tile(dim, target, align):
    """Largest multiple of `align` that divides `dim` and is <= `target`.

    Falls back to the full dimension (always layout-legal) when `dim` already
    fits in `target` or when no aligned divisor exists."""
    if dim <= target:
        return dim
    t = (target // align) * align
    while t >= align:
        if dim % t == 0:
            return t
        t -= align
    return dim


def _gelu(y):
    # tanh-approximate GELU: the tanh lowers to the EUP slot (the erf expansion
    # is a long VALU chain on v5e).  Swap to the erf form for exact BERT parity.
    return jax.nn.gelu(y, approximate=True)


# ----------------------------- Pallas kernels ------------------------------

def _add_ln_kernel(x_ref, y_ref, g_ref, b_ref, o_ref):
    """out = LayerNorm(x + y) over the last dim (f32 math, bf16 store)."""
    z = x_ref[...].astype(jnp.float32) + y_ref[...].astype(jnp.float32)
    mean = jnp.mean(z, axis=-1, keepdims=True)
    var = jnp.mean(jnp.square(z - mean), axis=-1, keepdims=True)
    o_ref[...] = ((z - mean) * lax.rsqrt(var + LN_EPS)
                  * g_ref[...] + b_ref[...]).astype(o_ref.dtype)


def _attention_block_kernel(x_ref, wqkv_ref, bqkv_ref, wo_ref, bo_ref,
                            g_ref, bt_ref, o_ref, attn_ref, *,
                            n_heads, head_dim, scale):
    """Fully fused encoder attention block for one batch element:

        qkv  = x @ Wqkv + bqkv                 (head-major column layout)
        attn = concat_h softmax(q_h k_h^T * scale) v_h
        out  = LayerNorm(attn @ Wo + bo + x)

    Wqkv columns are head-major ([q_h | k_h | v_h] blocks of width 3*head_dim)
    so each head touches one contiguous lane range.  Per-head results are
    written straight into the VMEM scratch `attn_ref` (no jnp.concatenate lane
    shuffles) and the final (S, H) result is stored once, lane-dense.
    """
    x = x_ref[0]                                                    # (S, H) bf16
    qkv = jnp.dot(x, wqkv_ref[...],
                  preferred_element_type=jnp.float32) + bqkv_ref[...]  # (S, 3H) f32

    for h in range(n_heads):      # static unroll; heads write disjoint slices
        base = 3 * head_dim * h
        q = (qkv[:, base:base + head_dim] * scale).astype(x.dtype)
        k = qkv[:, base + head_dim:base + 2 * head_dim].astype(x.dtype)
        v = qkv[:, base + 2 * head_dim:base + 3 * head_dim].astype(x.dtype)
        # contract the feature dim of both q and k -> no k.T / XLU transpose
        s = lax.dot_general(q, k, (((1,), (1,)), ((), ())),
                            preferred_element_type=jnp.float32)       # (S, S)
        s = s - jnp.max(s, axis=-1, keepdims=True)
        p = jnp.exp(s)
        # softmax denominator on the EUP slot (essentially free here)
        p = p * pl.reciprocal(jnp.sum(p, axis=-1, keepdims=True), approx=True)
        o = jnp.dot(p.astype(x.dtype), v, preferred_element_type=jnp.float32)
        attn_ref[:, h * head_dim:(h + 1) * head_dim] = o.astype(attn_ref.dtype)

    z = (jnp.dot(attn_ref[...], wo_ref[...],
                 preferred_element_type=jnp.float32)
         + bo_ref[...] + x.astype(jnp.float32))
    mean = jnp.mean(z, axis=-1, keepdims=True)
    var = jnp.mean(jnp.square(z - mean), axis=-1, keepdims=True)
    o_ref[0] = ((z - mean) * lax.rsqrt(var + LN_EPS)
                * g_ref[...] + bt_ref[...]).astype(o_ref.dtype)
    # TODO(synk): no padding mask is applied (toy config has no padding); a real
    # E5/BERT encoder adds the mask to `s` before the softmax.
    # TODO(synk): for long sequences add a flash-style KV-tile inner loop (and a
    # head grid axis) so per-head (S, S) logits stay bounded in VMEM.


def _ffn_block_kernel(x_ref, w1_ref, b1_ref, w2_ref, b2_ref, g_ref, bt_ref,
                      o_ref):
    """Fused FFN block for one token tile:
        out = LayerNorm(gelu(x @ W1 + b1) @ W2 + b2 + x)"""
    x = x_ref[...]                                                  # (tm, H) bf16
    h = jnp.dot(x, w1_ref[...], preferred_element_type=jnp.float32) + b1_ref[...]
    h = _gelu(h).astype(MATMUL_DTYPE)           # bf16 operand for the 2nd matmul
    z = (jnp.dot(h, w2_ref[...], preferred_element_type=jnp.float32)
         + b2_ref[...] + x.astype(jnp.float32))
    mean = jnp.mean(z, axis=-1, keepdims=True)
    var = jnp.mean(jnp.square(z - mean), axis=-1, keepdims=True)
    o_ref[...] = ((z - mean) * lax.rsqrt(var + LN_EPS)
                  * g_ref[...] + bt_ref[...]).astype(o_ref.dtype)


def _linear_kernel(x_ref, w_ref, b_ref, o_ref):
    """Bias-add linear (contrastive head).  K is un-tiled (K <= hidden)."""
    o_ref[...] = (jnp.dot(x_ref[...], w_ref[...],
                          preferred_element_type=jnp.float32)
                  + b_ref[...]).astype(o_ref.dtype)


# ----------------------------- kernel wrappers ------------------------------

def add_layernorm(x, y, gamma, beta, *, tm=512):
    """LayerNorm(x + y) over the last dim.  x, y: (M, H) -> bf16 (M, H)."""
    M, H = x.shape
    tm = _pick_tile(M, tm, 16)
    return pl.pallas_call(
        _add_ln_kernel,
        grid=(M // tm,),
        in_specs=[
            pl.BlockSpec((tm, H), lambda i: (i, 0)),
            pl.BlockSpec((tm, H), lambda i: (i, 0)),
            pl.BlockSpec((1, H), lambda i: (0, 0)),
            pl.BlockSpec((1, H), lambda i: (0, 0)),
        ],
        out_specs=pl.BlockSpec((tm, H), lambda i: (i, 0)),
        out_shape=jax.ShapeDtypeStruct((M, H), ACT_DTYPE),
        compiler_params=pltpu.CompilerParams(
            dimension_semantics=("parallel",),
            vmem_limit_bytes=VMEM_BUDGET),
    )(x, y, gamma.reshape(1, H), beta.reshape(1, H))


def attention_block(x, wqkv, bqkv, wo, bo, gamma, beta, *, batch, seq, n_heads):
    """Fused attention block.  x: (B*S, H) bf16 -> (B*S, H) bf16."""
    B, S = batch, seq
    H = x.shape[-1]
    assert H % n_heads == 0
    dh = H // n_heads
    scale = 1.0 / math.sqrt(dh)
    x3 = x.reshape(B, S, H)
    out = pl.pallas_call(
        partial(_attention_block_kernel, n_heads=n_heads, head_dim=dh,
                scale=scale),
        grid=(B,),
        in_specs=[
            pl.BlockSpec((1, S, H), lambda b: (b, 0, 0)),
            pl.BlockSpec((H, 3 * H), lambda b: (0, 0)),   # constant -> resident
            pl.BlockSpec((1, 3 * H), lambda b: (0, 0)),
            pl.BlockSpec((H, H), lambda b: (0, 0)),
            pl.BlockSpec((1, H), lambda b: (0, 0)),
            pl.BlockSpec((1, H), lambda b: (0, 0)),
            pl.BlockSpec((1, H), lambda b: (0, 0)),
        ],
        out_specs=pl.BlockSpec((1, S, H), lambda b: (b, 0, 0)),
        out_shape=jax.ShapeDtypeStruct((B, S, H), ACT_DTYPE),
        scratch_shapes=[pltpu.VMEM((S, H), ACT_DTYPE)],
        compiler_params=pltpu.CompilerParams(
            dimension_semantics=("parallel",),
            vmem_limit_bytes=VMEM_BUDGET),
    )(x3, wqkv, bqkv.reshape(1, 3 * H), wo, bo.reshape(1, H),
      gamma.reshape(1, H), beta.reshape(1, H))
    return out.reshape(B * S, H)


def ffn_block(x, w1, b1, w2, b2, gamma, beta, *, tm=256):
    """Fused FFN block.  x: (M, H) bf16 -> (M, H) bf16."""
    M, H = x.shape
    I = w1.shape[1]

    def vmem_est(t):
        # double-buffered bf16 in/out tiles + (conservatively double-buffered)
        # bf16 weights + f32 in-kernel intermediates (h, z)
        return (2 * 2 * (t * H * 2)
                + 2 * (H * I + I * H) * 2
                + t * I * 4 + t * H * 4)

    tm = _pick_tile(M, tm, 16)
    while vmem_est(tm) > VMEM_BUDGET // 2:
        smaller = _pick_tile(M, max(16, tm // 2), 16)
        if smaller >= tm:
            break
        tm = smaller

    return pl.pallas_call(
        _ffn_block_kernel,
        grid=(M // tm,),
        in_specs=[
            pl.BlockSpec((tm, H), lambda i: (i, 0)),
            pl.BlockSpec((H, I), lambda i: (0, 0)),       # constant -> resident
            pl.BlockSpec((1, I), lambda i: (0, 0)),
            pl.BlockSpec((I, H), lambda i: (0, 0)),
            pl.BlockSpec((1, H), lambda i: (0, 0)),
            pl.BlockSpec((1, H), lambda i: (0, 0)),
            pl.BlockSpec((1, H), lambda i: (0, 0)),
        ],
        out_specs=pl.BlockSpec((tm, H), lambda i: (i, 0)),
        out_shape=jax.ShapeDtypeStruct((M, H), ACT_DTYPE),
        compiler_params=pltpu.CompilerParams(
            dimension_semantics=("parallel",),
            vmem_limit_bytes=VMEM_BUDGET),
    )(x, w1, b1.reshape(1, I), w2, b2.reshape(1, H),
      gamma.reshape(1, H), beta.reshape(1, H))


def linear(x, w, b, *, out_dtype=jnp.float32, tm=256, tn=512):
    """x: (M, K) @ w: (K, N) + b -> (M, N).  Used for the contrastive head."""
    M, K = x.shape
    N = w.shape[1]
    tm = _pick_tile(M, tm, 16)
    tn = _pick_tile(N, tn, 128)
    return pl.pallas_call(
        _linear_kernel,
        grid=(M // tm, N // tn),
        in_specs=[
            pl.BlockSpec((tm, K), lambda i, j: (i, 0)),
            # TODO(synk): on v5e, if the bundle dump shows exposed weight DMA,
            # add pipeline_mode=pl.Buffered(3) on this BlockSpec.
            pl.BlockSpec((K, tn), lambda i, j: (0, j)),
            pl.BlockSpec((1, tn), lambda i, j: (0, j)),
        ],
        out_specs=pl.BlockSpec((tm, tn), lambda i, j: (i, j)),
        out_shape=jax.ShapeDtypeStruct((M, N), out_dtype),
        compiler_params=pltpu.CompilerParams(
            dimension_semantics=("parallel", "parallel"),
            vmem_limit_bytes=VMEM_BUDGET),
    )(x.astype(MATMUL_DTYPE), w.astype(MATMUL_DTYPE), b.reshape(1, N))


# ----------------------------- model definition -----------------------------

def init_params(key, *, vocab_size, hidden, n_layers, n_heads, intermediate,
                max_pos):
    def nrm(k, shape, dtype=jnp.float32, scale=0.02):
        return (scale * jax.random.normal(k, shape, dtype=jnp.float32)).astype(dtype)

    keys = iter(jax.random.split(key, 8 + n_layers * 10))
    p = {
        "word_emb": nrm(next(keys), (vocab_size, hidden)),
        "pos_emb": nrm(next(keys), (max_pos, hidden)),
        "tok_type_emb": nrm(next(keys), (2, hidden)),
        "emb_ln_g": jnp.ones((hidden,), jnp.float32),
        "emb_ln_b": jnp.zeros((hidden,), jnp.float32),
        "head_w": nrm(next(keys), (hidden, hidden), MATMUL_DTYPE),
        "head_b": nrm(next(keys), (hidden,)),
        "layers": [],
    }
    for _ in range(n_layers):
        layer = {
            # Fused QKV projection, HEAD-MAJOR column layout:
            # columns [3*dh*h : 3*dh*(h+1)] = [q_h | k_h | v_h].
            "wqkv": nrm(next(keys), (hidden, 3 * hidden), MATMUL_DTYPE),
            "bqkv": nrm(next(keys), (3 * hidden,)),
            "wo": nrm(next(keys), (hidden, hidden), MATMUL_DTYPE),
            "bo": nrm(next(keys), (hidden,)),
            "ln1_g": jnp.ones((hidden,), jnp.float32),
            "ln1_b": jnp.zeros((hidden,), jnp.float32),
            "w1": nrm(next(keys), (hidden, intermediate), MATMUL_DTYPE),
            "b1": nrm(next(keys), (intermediate,)),
            "w2": nrm(next(keys), (intermediate, hidden), MATMUL_DTYPE),
            "b2": nrm(next(keys), (hidden,)),
            "ln2_g": jnp.ones((hidden,), jnp.float32),
            "ln2_b": jnp.zeros((hidden,), jnp.float32),
        }
        p["layers"].append(layer)
    return p


def e5_small_forward(params, input_ids, *, n_heads):
    B, S = input_ids.shape
    H = params["word_emb"].shape[1]

    # Embedding lookup (gather) kept as plain-JAX glue.
    emb = jnp.take(params["word_emb"], input_ids, axis=0)            # (B,S,H) f32
    pos_tok = params["pos_emb"][:S] + params["tok_type_emb"][0]      # (S,H)
    pos_tok = jnp.broadcast_to(pos_tok[None], (B, S, H))

    # BERT embedding layer: word + position + token_type, then LayerNorm.
    x = add_layernorm(emb.reshape(B * S, H), pos_tok.reshape(B * S, H),
                      params["emb_ln_g"], params["emb_ln_b"])        # (B*S,H) bf16

    for layer in params["layers"]:
        # Fused: QKV proj -> per-head attention -> out proj -> residual -> LN.
        x = attention_block(x, layer["wqkv"], layer["bqkv"],
                            layer["wo"], layer["bo"],
                            layer["ln1_g"], layer["ln1_b"],
                            batch=B, seq=S, n_heads=n_heads)
        # Fused: up-proj -> GELU -> down-proj -> residual -> LN.
        x = ffn_block(x, layer["w1"], layer["b1"], layer["w2"], layer["b2"],
                      layer["ln2_g"], layer["ln2_b"])

    cls = x.reshape(B, S, H)[:, 0, :]                                # (B, H)
    return linear(cls, params["head_w"], params["head_b"])           # (B, H) f32


# ---------------------------------- main ------------------------------------

if __name__ == "__main__":
    # Small synthetic config consistent with the module's forward:
    # vocab=100, embedding_dim=hidden=32, 2 encoder layers, 4 heads,
    # intermediate=64, seq=8, batch=2.
    VOCAB = 100
    HIDDEN = 32
    N_LAYERS = 2
    N_HEADS = 4
    INTERMEDIATE = 64
    MAX_POS = 16
    B, S = 2, 8

    key = jax.random.PRNGKey(0)
    pkey, ikey = jax.random.split(key)
    params = init_params(pkey, vocab_size=VOCAB, hidden=HIDDEN,
                         n_layers=N_LAYERS, n_heads=N_HEADS,
                         intermediate=INTERMEDIATE, max_pos=MAX_POS)
    input_ids = jax.random.randint(ikey, (B, S), 0, VOCAB, dtype=jnp.int32)

    fwd = jax.jit(partial(e5_small_forward, n_heads=N_HEADS))
    out = fwd(params, input_ids)
    jax.block_until_ready(out)
    assert out.shape == (B, HIDDEN)
    print("KERNEL_OK")
</pallas_src>

<mosaic_0001>
module attributes {stable_mosaic.version = 11 : i64} {
  func.func @_add_ln_kernel(%arg0: i32, %arg1: memref<16x32xf32, #tpu.memory_space<vmem>>, %arg2: memref<16x32xf32, #tpu.memory_space<vmem>>, %arg3: memref<1x32xf32, #tpu.memory_space<vmem>>, %arg4: memref<1x32xf32, #tpu.memory_space<vmem>>, %arg5: memref<16x32xbf16, #tpu.memory_space<vmem>>) attributes {dimension_semantics = [#tpu.dimension_semantics<parallel>], iteration_bounds = array<i64: 1>, scalar_prefetch = 0 : i64, scratch_operands = 0 : i64, tpu.core_type = #tpu.core_type<tc>, window_params = [{transform_indices = @transform_0, window_bounds = array<i64: 16, 32>}, {transform_indices = @transform_1, window_bounds = array<i64: 16, 32>}, {pipeline_mode = #tpu.pipeline_mode<synchronous>, transform_indices = @transform_2, window_bounds = array<i64: 1, 32>}, {pipeline_mode = #tpu.pipeline_mode<synchronous>, transform_indices = @transform_3, window_bounds = array<i64: 1, 32>}, {transform_indices = @transform_4, window_bounds = array<i64: 16, 32>}]} {
    %c0 = arith.constant 0 : index
    %c0_0 = arith.constant 0 : index
    %0 = vector.load %arg1[%c0, %c0_0] : memref<16x32xf32, #tpu.memory_space<vmem>>, vector<16x32xf32>
    %c0_1 = arith.constant 0 : index
    %c0_2 = arith.constant 0 : index
    %1 = vector.load %arg2[%c0_1, %c0_2] : memref<16x32xf32, #tpu.memory_space<vmem>>, vector<16x32xf32>
    %2 = arith.addf %0, %1 : vector<16x32xf32>
    %cst = arith.constant dense<0.000000e+00> : vector<16xf32>
    %3 = vector.multi_reduction <add>, %2, %cst [1] : vector<16x32xf32> to vector<16xf32>
    %4 = vector.shape_cast %3 : vector<16xf32> to vector<16x1xf32>
    %cst_3 = arith.constant 3.200000e+01 : f32
    %5 = vector.broadcast %cst_3 : f32 to vector<16x1xf32>
    %6 = arith.divf %4, %5 : vector<16x1xf32>
    %7 = vector.broadcast %6 : vector<16x1xf32> to vector<16x32xf32>
    %8 = arith.subf %2, %7 : vector<16x32xf32>
    %9 = arith.mulf %8, %8 : vector<16x32xf32>
    %cst_4 = arith.constant dense<0.000000e+00> : vector<16xf32>
    %10 = vector.multi_reduction <add>, %9, %cst_4 [1] : vector<16x32xf32> to vector<16xf32>
    %11 = vector.shape_cast %10 : vector<16xf32> to vector<16x1xf32>
    %cst_5 = arith.constant 3.200000e+01 : f32
    %12 = vector.broadcast %cst_5 : f32 to vector<16x1xf32>
    %13 = arith.divf %11, %12 : vector<16x1xf32>
    %14 = vector.broadcast %6 : vector<16x1xf32> to vector<16x32xf32>
    %15 = arith.subf %2, %14 : vector<16x32xf32>
    %cst_6 = arith.constant 9.99999996E-13 : f32
    %16 = vector.broadcast %cst_6 : f32 to vector<16x1xf32>
    %17 = arith.addf %13, %16 : vector<16x1xf32>
    %18 = math.rsqrt %17 : vector<16x1xf32>
    %19 = vector.broadcast %18 : vector<16x1xf32> to vector<16x32xf32>
    %20 = arith.mulf %15, %19 : vector<16x32xf32>
    %c0_7 = arith.constant 0 : index
    %c0_8 = arith.constant 0 : index
    %21 = vector.load %arg3[%c0_7, %c0_8] : memref<1x32xf32, #tpu.memory_space<vmem>>, vector<1x32xf32>
    %22 = vector.broadcast %21 : vector<1x32xf32> to vector<16x32xf32>
    %23 = arith.mulf %20, %22 : vector<16x32xf32>
    %c0_9 = arith.constant 0 : index
    %c0_10 = arith.constant 0 : index
    %24 = vector.load %arg4[%c0_9, %c0_10] : memref<1x32xf32, #tpu.memory_space<vmem>>, vector<1x32xf32>
    %25 = vector.broadcast %24 : vector<1x32xf32> to vector<16x32xf32>
    %26 = arith.addf %23, %25 : vector<16x32xf32>
    %27 = arith.truncf %26 : vector<16x32xf32> to vector<16x32xbf16>
    %c0_11 = arith.constant 0 : index
    %c0_12 = arith.constant 0 : index
    %28 = vector.load %arg5[%c0_11, %c0_12] : memref<16x32xbf16, #tpu.memory_space<vmem>>, vector<16x32xbf16>
    tpu.vector_store %arg5[%c0_11, %c0_12], %27 {strides = array<i32>} : memref<16x32xbf16, #tpu.memory_space<vmem>>, vector<16x32xbf16>,
    return
  }
  func.func @transform_0(%arg0: i32) -> (i32, i32) {
    %c0_i32 = arith.constant 0 : i32
    %c0_i32_0 = arith.constant 0 : i32
    return %arg0, %c0_i32 : i32, i32
  }
  func.func @transform_1(%arg0: i32) -> (i32, i32) {
    %c0_i32 = arith.constant 0 : i32
    %c0_i32_0 = arith.constant 0 : i32
    return %arg0, %c0_i32 : i32, i32
  }
  func.func @transform_2(%arg0: i32) -> (i32, i32) {
    %c0_i32 = arith.constant 0 : i32
    %c0_i32_0 = arith.constant 0 : i32
    %c0_i32_1 = arith.constant 0 : i32
    return %c0_i32, %c0_i32_0 : i32, i32
  }
  func.func @transform_3(%arg0: i32) -> (i32, i32) {
    %c0_i32 = arith.constant 0 : i32
    %c0_i32_0 = arith.constant 0 : i32
    %c0_i32_1 = arith.constant 0 : i32
    return %c0_i32, %c0_i32_0 : i32, i32
  }
  func.func @transform_4(%arg0: i32) -> (i32, i32) {
    %c0_i32 = arith.constant 0 : i32
    %c0_i32_0 = arith.constant 0 : i32
    return %arg0, %c0_i32 : i32, i32
  }
}

module attributes {stable_mosaic.version = 11 : i64} {
  func.func @_ffn_block_kernel(%arg0: i32, %arg1: memref<16x32xbf16, #tpu.memory_space<vmem>>, %arg2: memref<32x64xbf16, #tpu.memory_space<vmem>>, %arg3: memref<1x64xf32, #tpu.memory_space<vmem>>, %arg4: memref<64x32xbf16, #tpu.memory_space<vmem>>, %arg5: memref<1x32xf32, #tpu.memory_space<vmem>>, %arg6: memref<1x32xf32, #tpu.memory_space<vmem>>, %arg7: memref<1x32xf32, #tpu.memory_space<vmem>>, %arg8: memref<16x32xbf16, #tpu.memory_space<vmem>>) attributes {dimension_semantics = [#tpu.dimension_semantics<parallel>], iteration_bounds = array<i64: 1>, scalar_prefetch = 0 : i64, scratch_operands = 0 : i64, tpu.core_type = #tpu.core_type<tc>, window_params = [{transform_indices = @transform_0, window_bounds = array<i64: 16, 32>}, {pipeline_mode = #tpu.pipeline_mode<synchronous>, transform_indices = @transform_1, window_bounds = array<i64: 32, 64>}, {pipeline_mode = #tpu.pipeline_mode<synchronous>, transform_indices = @transform_2, window_bounds = array<i64: 1, 64>}, {pipeline_mode = #tpu.pipeline_mode<synchronous>, transform_indices = @transform_3, window_bounds = array<i64: 64, 32>}, {pipeline_mode = #tpu.pipeline_mode<synchronous>, transform_indices = @transform_4, window_bounds = array<i64: 1, 32>}, {pipeline_mode = #tpu.pipeline_mode<synchronous>, transform_indices = @transform_5, window_bounds = array<i64: 1, 32>}, {pipeline_mode = #tpu.pipeline_mode<synchronous>, transform_indices = @transform_6, window_bounds = array<i64: 1, 32>}, {transform_indices = @transform_7, window_bounds = array<i64: 16, 32>}]} {
    %c0 = arith.constant 0 : index
    %c0_0 = arith.constant 0 : index
    %0 = vector.load %arg1[%c0, %c0_0] : memref<16x32xbf16, #tpu.memory_space<vmem>>, vector<16x32xbf16>
    %c0_1 = arith.constant 0 : index
    %c0_2 = arith.constant 0 : index
    %1 = vector.load %arg2[%c0_1, %c0_2] : memref<32x64xbf16, #tpu.memory_space<vmem>>, vector<32x64xbf16>
    %cst = arith.constant dense<0.000000e+00> : vector<16x64xf32>
    %2 = tpu.matmul %0, %1, %cst {dimension_numbers = #tpu.dot_dimension_numbers<[1], [0], [0], [1], [0, 0, 1, 1], [], []>} : vector<16x32xbf16>, vector<32x64xbf16>, vector<16x64xf32> -> vector<16x64xf32>
    %c0_3 = arith.constant 0 : index
    %c0_4 = arith.constant 0 : index
    %3 = vector.load %arg3[%c0_3, %c0_4] : memref<1x64xf32, #tpu.memory_space<vmem>>, vector<1x64xf32>
    %4 = vector.broadcast %3 : vector<1x64xf32> to vector<16x64xf32>
    %5 = arith.addf %2, %4 : vector<16x64xf32>
    %6 = arith.mulf %5, %5 : vector<16x64xf32>
    %7 = arith.mulf %5, %6 : vector<16x64xf32>
    %cst_5 = arith.constant 4.471500e-02 : f32
    %8 = vector.broadcast %cst_5 : f32 to vector<16x64xf32>
    %9 = arith.mulf %8, %7 : vector<16x64xf32>
    %10 = arith.addf %5, %9 : vector<16x64xf32>
    %cst_6 = arith.constant 0.797884583 : f32
    %11 = vector.broadcast %cst_6 : f32 to vector<16x64xf32>
    %12 = arith.mulf %11, %10 : vector<16x64xf32>
    %13 = math.tanh %12 : vector<16x64xf32>
    %cst_7 = arith.constant 1.000000e+00 : f32
    %14 = vector.broadcast %cst_7 : f32 to vector<16x64xf32>
    %15 = arith.addf %14, %13 : vector<16x64xf32>
    %cst_8 = arith.constant 5.000000e-01 : f32
    %16 = vector.broadcast %cst_8 : f32 to vector<16x64xf32>
    %17 = arith.mulf %16, %15 : vector<16x64xf32>
    %18 = arith.mulf %5, %17 : vector<16x64xf32>
    %19 = arith.truncf %18 : vector<16x64xf32> to vector<16x64xbf16>
    %c0_9 = arith.constant 0 : index
    %c0_10 = arith.constant 0 : index
    %20 = vector.load %arg4[%c0_9, %c0_10] : memref<64x32xbf16, #tpu.memory_space<vmem>>, vector<64x32xbf16>
    %cst_11 = arith.constant dense<0.000000e+00> : vector<16x32xf32>
    %21 = tpu.matmul %19, %20, %cst_11 {dimension_numbers = #tpu.dot_dimension_numbers<[1], [0], [0], [1], [0, 0, 1, 1], [], []>} : vector<16x64xbf16>, vector<64x32xbf16>, vector<16x32xf32> -> vector<16x32xf32>
    %c0_12 = arith.constant 0 : index
    %c0_13 = arith.constant 0 : index
    %22 = vector.load %arg5[%c0_12, %c0_13] : memref<1x32xf32, #tpu.memory_space<vmem>>, vector<1x32xf32>
    %23 = vector.broadcast %22 : vector<1x32xf32> to vector<16x32xf32>
    %24 = arith.addf %21, %23 : vector<16x32xf32>
    %25 = arith.extf %0 : vector<16x32xbf16> to vector<16x32xf32>
    %26 = arith.addf %24, %25 : vector<16x32xf32>
    %cst_14 = arith.constant dense<0.000000e+00> : vector<16xf32>
    %27 = vector.multi_reduction <add>, %26, %cst_14 [1] : vector<16x32xf32> to vector<16xf32>
    %28 = vector.shape_cast %27 : vector<16xf32> to vector<16x1xf32>
    %cst_15 = arith.constant 3.200000e+01 : f32
    %29 = vector.broadcast %cst_15 : f32 to vector<16x1xf32>
    %30 = arith.divf %28, %29 : vector<16x1xf32>
    %31 = vector.broadcast %30 : vector<16x1xf32> to vector<16x32xf32>
    %32 = arith.subf %26, %31 : vector<16x32xf32>
    %33 = arith.mulf %32, %32 : vector<16x32xf32>
    %cst_16 = arith.constant dense<0.000000e+00> : vector<16xf32>
    %34 = vector.multi_reduction <add>, %33, %cst_16 [1] : vector<16x32xf32> to vector<16xf32>
    %35 = vector.shape_cast %34 : vector<16xf32> to vector<16x1xf32>
    %cst_17 = arith.constant 3.200000e+01 : f32
    %36 = vector.broadcast %cst_17 : f32 to vector<16x1xf32>
    %37 = arith.divf %35, %36 : vector<16x1xf32>
    %38 = vector.broadcast %30 : vector<16x1xf32> to vector<16x32xf32>
    %39 = arith.subf %26, %38 : vector<16x32xf32>
    %cst_18 = arith.constant 9.99999996E-13 : f32
    %40 = vector.broadcast %cst_18 : f32 to vector<16x1xf32>
    %41 = arith.addf %37, %40 : vector<16x1xf32>
    %42 = math.rsqrt %41 : vector<16x1xf32>
    %43 = vector.broadcast %42 : vector<16x1xf32> to vector<16x32xf32>
    %44 = arith.mulf %39, %43 : vector<16x32xf32>
    %c0_19 = arith.constant 0 : index
    %c0_20 = arith.constant 0 : index
    %45 = vector.load %arg6[%c0_19, %c0_20] : memref<1x32xf32, #tpu.memory_space<vmem>>, vector<1x32xf32>
    %46 = vector.broadcast %45 : vector<1x32xf32> to vector<16x32xf32>
    %47 = arith.mulf %44, %46 : vector<16x32xf32>
    %c0_21 = arith.constant 0 : index
    %c0_22 = arith.constant 0 : index
    %48 = vector.load %arg7[%c0_21, %c0_22] : memref<1x32xf32, #tpu.memory_space<vmem>>, vector<1x32xf32>
    %49 = vector.broadcast %48 : vector<1x32xf32> to vector<16x32xf32>
    %50 = arith.addf %47, %49 : vector<16x32xf32>
    %51 = arith.truncf %50 : vector<16x32xf32> to vector<16x32xbf16>
    %c0_23 = arith.constant 0 : index
    %c0_24 = arith.constant 0 : index
    %52 = vector.load %arg8[%c0_23, %c0_24] : memref<16x32xbf16, #tpu.memory_space<vmem>>, vector<16x32xbf16>
    tpu.vector_store %arg8[%c0_23, %c0_24], %51 {strides = array<i32>} : memref<16x32xbf16, #tpu.memory_space<vmem>>, vector<16x32xbf16>,
    return
  }
  func.func @transform_0(%arg0: i32) -> (i32, i32) {
    %c0_i32 = arith.constant 0 : i32
    %c0_i32_0 = arith.constant 0 : i32
    return %arg0, %c0_i32 : i32, i32
  }
  func.func @transform_1(%arg0: i32) -> (i32, i32) {
    %c0_i32 = arith.constant 0 : i32
    %c0_i32_0 = arith.constant 0 : i32
    %c0_i32_1 = arith.constant 0 : i32
    return %c0_i32, %c0_i32_0 : i32, i32
  }
  func.func @transform_2(%arg0: i32) -> (i32, i32) {
    %c0_i32 = arith.constant 0 : i32
    %c0_i32_0 = arith.constant 0 : i32
    %c0_i32_1 = arith.constant 0 : i32
    return %c0_i32, %c0_i32_0 : i32, i32
  }
  func.func @transform_3(%arg0: i32) -> (i32, i32) {
    %c0_i32 = arith.constant 0 : i32
    %c0_i32_0 = arith.constant 0 : i32
    %c0_i32_1 = arith.constant 0 : i32
    return %c0_i32, %c0_i32_0 : i32, i32
  }
  func.func @transform_4(%arg0: i32) -> (i32, i32) {
    %c0_i32 = arith.constant 0 : i32
    %c0_i32_0 = arith.constant 0 : i32
    %c0_i32_1 = arith.constant 0 : i32
    return %c0_i32, %c0_i32_0 : i32, i32
  }
  func.func @transform_5(%arg0: i32) -> (i32, i32) {
    %c0_i32 = arith.constant 0 : i32
    %c0_i32_0 = arith.constant 0 : i32
    %c0_i32_1 = arith.constant 0 : i32
    return %c0_i32, %c0_i32_0 : i32, i32
  }
  func.func @transform_6(%arg0: i32) -> (i32, i32) {
    %c0_i32 = arith.constant 0 : i32
    %c0_i32_0 = arith.constant 0 : i32
    %c0_i32_1 = arith.constant 0 : i32
    return %c0_i32, %c0_i32_0 : i32, i32
  }
  func.func @transform_7(%arg0: i32) -> (i32, i32) {
    %c0_i32 = arith.constant 0 : i32
    %c0_i32_0 = arith.constant 0 : i32
    return %arg0, %c0_i32 : i32, i32
  }
}

module attributes {stable_mosaic.version = 11 : i64} {
  func.func @_attention_block_kernel(%arg0: i32, %arg1: memref<1x8x32xbf16, #tpu.memory_space<vmem>>, %arg2: memref<32x96xbf16, #tpu.memory_space<vmem>>, %arg3: memref<1x96xf32, #tpu.memory_space<vmem>>, %arg4: memref<32x32xbf16, #tpu.memory_space<vmem>>, %arg5: memref<1x32xf32, #tpu.memory_space<vmem>>, %arg6: memref<1x32xf32, #tpu.memory_space<vmem>>, %arg7: memref<1x32xf32, #tpu.memory_space<vmem>>, %arg8: memref<1x8x32xbf16, #tpu.memory_space<vmem>>, %arg9: memref<8x32xbf16, #tpu.memory_space<vmem>>) attributes {dimension_semantics = [#tpu.dimension_semantics<parallel>], iteration_bounds = array<i64: 2>, scalar_prefetch = 0 : i64, scratch_operands = 1 : i64, tpu.core_type = #tpu.core_type<tc>, window_params = [{transform_indices = @transform_0, window_bounds = array<i64: 1, 8, 32>}, {pipeline_mode = #tpu.pipeline_mode<synchronous>, transform_indices = @transform_1, window_bounds = array<i64: 32, 96>}, {pipeline_mode = #tpu.pipeline_mode<synchronous>, transform_indices = @transform_2, window_bounds = array<i64: 1, 96>}, {pipeline_mode = #tpu.pipeline_mode<synchronous>, transform_indices = @transform_3, window_bounds = array<i64: 32, 32>}, {pipeline_mode = #tpu.pipeline_mode<synchronous>, transform_indices = @transform_4, window_bounds = array<i64: 1, 32>}, {pipeline_mode = #tpu.pipeline_mode<synchronous>, transform_indices = @transform_5, window_bounds = array<i64: 1, 32>}, {pipeline_mode = #tpu.pipeline_mode<synchronous>, transform_indices = @transform_6, window_bounds = array<i64: 1, 32>}, {transform_indices = @transform_7, window_bounds = array<i64: 1, 8, 32>}]} {
    %c0 = arith.constant 0 : index
    %c0_0 = arith.constant 0 : index
    %c0_1 = arith.constant 0 : index
    %0 = vector.load %arg1[%c0, %c0_0, %c0_1] : memref<1x8x32xbf16, #tpu.memory_space<vmem>>, vector<1x8x32xbf16>
    %1 = vector.shape_cast %0 : vector<1x8x32xbf16> to vector<8x32xbf16>
    %c0_2 = arith.constant 0 : index
    %c0_3 = arith.constant 0 : index
    %2 = vector.load %arg2[%c0_2, %c0_3] : memref<32x96xbf16, #tpu.memory_space<vmem>>, vector<32x96xbf16>
    %cst = arith.constant dense<0.000000e+00> : vector<8x96xf32>
    %3 = tpu.matmul %1, %2, %cst {dimension_numbers = #tpu.dot_dimension_numbers<[1], [0], [0], [1], [0, 0, 1, 1], [], []>} : vector<8x32xbf16>, vector<32x96xbf16>, vector<8x96xf32> -> vector<8x96xf32>
    %c0_4 = arith.constant 0 : index
    %c0_5 = arith.constant 0 : index
    %4 = vector.load %arg3[%c0_4, %c0_5] : memref<1x96xf32, #tpu.memory_space<vmem>>, vector<1x96xf32>
    %5 = vector.broadcast %4 : vector<1x96xf32> to vector<8x96xf32>
    %6 = arith.addf %3, %5 : vector<8x96xf32>
    %7 = vector.extract_strided_slice %6 {offsets = [0, 0], sizes = [8, 8], strides = [1, 1]} : vector<8x96xf32> to vector<8x8xf32>
    %cst_6 = arith.constant 0.353553385 : f32
    %8 = vector.broadcast %cst_6 : f32 to vector<8x8xf32>
    %9 = arith.mulf %7, %8 : vector<8x8xf32>
    %10 = arith.truncf %9 : vector<8x8xf32> to vector<8x8xbf16>
    %11 = vector.extract_strided_slice %6 {offsets = [0, 8], sizes = [8, 8], strides = [1, 1]} : vector<8x96xf32> to vector<8x8xf32>
    %12 = arith.truncf %11 : vector<8x8xf32> to vector<8x8xbf16>
    %13 = vector.extract_strided_slice %6 {offsets = [0, 16], sizes = [8, 8], strides = [1, 1]} : vector<8x96xf32> to vector<8x8xf32>
    %14 = arith.truncf %13 : vector<8x8xf32> to vector<8x8xbf16>
    %cst_7 = arith.constant dense<0.000000e+00> : vector<8x8xf32>
    %15 = tpu.matmul %10, %12, %cst_7 {dimension_numbers = #tpu.dot_dimension_numbers<[1], [1], [0], [0], [0, 0, 1, 0], [], []>} : vector<8x8xbf16>, vector<8x8xbf16>, vector<8x8xf32> -> vector<8x8xf32>
    %cst_8 = arith.constant dense<0xFF800000> : vector<8xf32>
    %16 = vector.multi_reduction <maximumf>, %15, %cst_8 [1] : vector<8x8xf32> to vector<8xf32>
    %17 = vector.shape_cast %16 : vector<8xf32> to vector<8x1xf32>
    %18 = vector.broadcast %17 : vector<8x1xf32> to vector<8x8xf32>
    %19 = arith.subf %15, %18 : vector<8x8xf32>
    %20 = math.exp %19 : vector<8x8xf32>
    %cst_9 = arith.constant dense<0.000000e+00> : vector<8xf32>
    %21 = vector.multi_reduction <add>, %20, %cst_9 [1] : vector<8x8xf32> to vector<8xf32>
    %22 = vector.shape_cast %21 : vector<8xf32> to vector<8x1xf32>
    %23 = tpu.reciprocal %22 {approx = true} : vector<8x1xf32> -> vector<8x1xf32>
    %24 = vector.broadcast %23 : vector<8x1xf32> to vector<8x8xf32>
    %25 = arith.mulf %20, %24 : vector<8x8xf32>
    %26 = arith.truncf %25 : vector<8x8xf32> to vector<8x8xbf16>
    %cst_10 = arith.constant dense<0.000000e+00> : vector<8x8xf32>
    %27 = tpu.matmul %26, %14, %cst_10 {dimension_numbers = #tpu.dot_dimension_numbers<[1], [0], [0], [1], [0, 0, 1, 1], [], []>} : vector<8x8xbf16>, vector<8x8xbf16>, vector<8x8xf32> -> vector<8x8xf32>
    %28 = arith.truncf %27 : vector<8x8xf32> to vector<8x8xbf16>
    %c0_11 = arith.constant 0 : index
    %c0_12 = arith.constant 0 : index
    %29 = vector.load %arg9[%c0_11, %c0_12] : memref<8x32xbf16, #tpu.memory_space<vmem>>, vector<8x8xbf16>
    tpu.vector_store %arg9[%c0_11, %c0_12], %28 {strides = array<i32>} : memref<8x32xbf16, #tpu.memory_space<vmem>>, vector<8x8xbf16>,
    %30 = vector.extract_strided_slice %6 {offsets = [0, 24], sizes = [8, 8], strides = [1, 1]} : vector<8x96xf32> to vector<8x8xf32>
    %cst_13 = arith.constant 0.353553385 : f32
    %31 = vector.broadcast %cst_13 : f32 to vector<8x8xf32>
    %32 = arith.mulf %30, %31 : vector<8x8xf32>
    %33 = arith.truncf %32 : vector<8x8xf32> to vector<8x8xbf16>
    %34 = vector.extract_strided_slice %6 {offsets = [0, 32], sizes = [8, 8], strides = [1, 1]} : vector<8x96xf32> to vector<8x8xf32>
    %35 = arith.truncf %34 : vector<8x8xf32> to vector<8x8xbf16>
    %36 = vector.extract_strided_slice %6 {offsets = [0, 40], sizes = [8, 8], strides = [1, 1]} : vector<8x96xf32> to vector<8x8xf32>
    %37 = arith.truncf %36 : vector<8x8xf32> to vector<8x8xbf16>
    %cst_14 = arith.constant dense<0.000000e+00> : vector<8x8xf32>
    %38 = tpu.matmul %33, %35, %cst_14 {dimension_numbers = #tpu.dot_dimension_numbers<[1], [1], [0], [0], [0, 0, 1, 0], [], []>} : vector<8x8xbf16>, vector<8x8xbf16>, vector<8x8xf32> -> vector<8x8xf32>
    %cst_15 = arith.constant dense<0xFF800000> : vector<8xf32>
    %39 = vector.multi_reduction <maximumf>, %38, %cst_15 [1] : vector<8x8xf32> to vector<8xf32>
    %40 = vector.shape_cast %39 : vector<8xf32> to vector<8x1xf32>
    %41 = vector.broadcast %40 : vector<8x1xf32> to vector<8x8xf32>
    %42 = arith.subf %38, %41 : vector<8x8xf32>
    %43 = math.exp %42 : vector<8x8xf32>
    %cst_16 = arith.constant dense<0.000000e+00> : vector<8xf32>
    %44 = vector.multi_reduction <add>, %43, %cst_16 [1] : vector<8x8xf32> to vector<8xf32>
    %45 = vector.shape_cast %44 : vector<8xf32> to vector<8x1xf32>
    %46 = tpu.reciprocal %45 {approx = true} : vector<8x1xf32> -> vector<8x1xf32>
    %47 = vector.broadcast %46 : vector<8x1xf32> to vector<8x8xf32>
    %48 = arith.mulf %43, %47 : vector<8x8xf32>
    %49 = arith.truncf %48 : vector<8x8xf32> to vector<8x8xbf16>
    %cst_17 = arith.constant dense<0.000000e+00> : vector<8x8xf32>
    %50 = tpu.matmul %49, %37, %cst_17 {dimension_numbers = #tpu.dot_dimension_numbers<[1], [0], [0], [1], [0, 0, 1, 1], [], []>} : vector<8x8xbf16>, vector<8x8xbf16>, vector<8x8xf32> -> vector<8x8xf32>
    %51 = arith.truncf %50 : vector<8x8xf32> to vector<8x8xbf16>
    %c0_18 = arith.constant 0 : index
    %c8 = arith.constant 8 : index
    %52 = vector.load %arg9[%c0_18, %c8] : memref<8x32xbf16, #tpu.memory_space<vmem>>, vector<8x8xbf16>
    tpu.vector_store %arg9[%c0_18, %c8], %51 {strides = array<i32>} : memref<8x32xbf16, #tpu.memory_space<vmem>>, vector<8x8xbf16>,
    %53 = vector.extract_strided_slice %6 {offsets = [0, 48], sizes = [8, 8], strides = [1, 1]} : vector<8x96xf32> to vector<8x8xf32>
    %cst_19 = arith.constant 0.353553385 : f32
    %54 = vector.broadcast %cst_19 : f32 to vector<8x8xf32>
    %55 = arith.mulf %53, %54 : vector<8x8xf32>
    %56 = arith.truncf %55 : vector<8x8xf32> to vector<8x8xbf16>
    %57 = vector.extract_strided_slice %6 {offsets = [0, 56], sizes = [8, 8], strides = [1, 1]} : vector<8x96xf32> to vector<8x8xf32>
    %58 = arith.truncf %57 : vector<8x8xf32> to vector<8x8xbf16>
    %59 = vector.extract_strided_slice %6 {offsets = [0, 64], sizes = [8, 8], strides = [1, 1]} : vector<8x96xf32> to vector<8x8xf32>
    %60 = arith.truncf %59 : vector<8x8xf32> to vector<8x8xbf16>
    %cst_20 = arith.constant dense<0.000000e+00> : vector<8x8xf32>
    %61 = tpu.matmul %56, %58, %cst_20 {dimension_numbers = #tpu.dot_dimension_numbers<[1], [1], [0], [0], [0, 0, 1, 0], [], []>} : vector<8x8xbf16>, vector<8x8xbf16>, vector<8x8xf32> -> vector<8x8xf32>
    %cst_21 = arith.constant dense<0xFF800000> : vector<8xf32>
    %62 = vector.multi_reduction <maximumf>, %61, %cst_21 [1] : vector<8x8xf32> to vector<8xf32>
    %63 = vector.shape_cast %62 : vector<8xf32> to vector<8x1xf32>
    %64 = vector.broadcast %63 : vector<8x1xf32> to vector<8x8xf32>
    %65 = arith.subf %61, %64 : vector<8x8xf32>
    %66 = math.exp %65 : vector<8x8xf32>
    %cst_22 = arith.constant dense<0.000000e+00> : vector<8xf32>
    %67 = vector.multi_reduction <add>, %66, %cst_22 [1] : vector<8x8xf32> to vector<8xf32>
    %68 = vector.shape_cast %67 : vector<8xf32> to vector<8x1xf32>
    %69 = tpu.reciprocal %68 {approx = true} : vector<8x1xf32> -> vector<8x1xf32>
    %70 = vector.broadcast %69 : vector<8x1xf32> to vector<8x8xf32>
    %71 = arith.mulf %66, %70 : vector<8x8xf32>
    %72 = arith.truncf %71 : vector<8x8xf32> to vector<8x8xbf16>
    %cst_23 = arith.constant dense<0.000000e+00> : vector<8x8xf32>
    %73 = tpu.matmul %72, %60, %cst_23 {dimension_numbers = #tpu.dot_dimension_numbers<[1], [0], [0], [1], [0, 0, 1, 1], [], []>} : vector<8x8xbf16>, vector<8x8xbf16>, vector<8x8xf32> -> vector<8x8xf32>
    %74 = arith.truncf %73 : vector<8x8xf32> to vector<8x8xbf16>
    %c0_24 = arith.constant 0 : index
    %c16 = arith.constant 16 : index
    %75 = vector.load %arg9[%c0_24, %c16] : memref<8x32xbf16, #tpu.memory_space<vmem>>, vector<8x8xbf16>
    tpu.vector_store %arg9[%c0_24, %c16], %74 {strides = array<i32>} : memref<8x32xbf16, #tpu.memory_space<vmem>>, vector<8x8xbf16>,
    %76 = vector.extract_strided_slice %6 {offsets = [0, 72], sizes = [8, 8], strides = [1, 1]} : vector<8x96xf32> to vector<8x8xf32>
    %cst_25 = arith.constant 0.353553385 : f32
    %77 = vector.broadcast %cst_25 : f32 to vector<8x8xf32>
    %78 = arith.mulf %76, %77 : vector<8x8xf32>
    %79 = arith.truncf %78 : vector<8x8xf32> to vector<8x8xbf16>
    %80 = vector.extract_strided_slice %6 {offsets = [0, 80], sizes = [8, 8], strides = [1, 1]} : vector<8x96xf32> to vector<8x8xf32>
    %81 = arith.truncf %80 : vector<8x8xf32> to vector<8x8xbf16>
    %82 = vector.extract_strided_slice %6 {offsets = [0, 88], sizes = [8, 8], strides = [1, 1]} : vector<8x96xf32> to vector<8x8xf32>
    %83 = arith.truncf %82 : vector<8x8xf32> to vector<8x8xbf16>
    %cst_26 = arith.constant dense<0.000000e+00> : vector<8x8xf32>
    %84 = tpu.matmul %79, %81, %cst_26 {dimension_numbers = #tpu.dot_dimension_numbers<[1], [1], [0], [0], [0, 0, 1, 0], [], []>} : vector<8x8xbf16>, vector<8x8xbf16>, vector<8x8xf32> -> vector<8x8xf32>
    %cst_27 = arith.constant dense<0xFF800000> : vector<8xf32>
    %85 = vector.multi_reduction <maximumf>, %84, %cst_27 [1] : vector<8x8xf32> to vector<8xf32>
    %86 = vector.shape_cast %85 : vector<8xf32> to vector<8x1xf32>
    %87 = vector.broadcast %86 : vector<8x1xf32> to vector<8x8xf32>
    %88 = arith.subf %84, %87 : vector<8x8xf32>
    %89 = math.exp %88 : vector<8x8xf32>
    %cst_28 = arith.constant dense<0.000000e+00> : vector<8xf32>
    %90 = vector.multi_reduction <add>, %89, %cst_28 [1] : vector<8x8xf32> to vector<8xf32>
    %91 = vector.shape_cast %90 : vector<8xf32> to vector<8x1xf32>
    %92 = tpu.reciprocal %91 {approx = true} : vector<8x1xf32> -> vector<8x1xf32>
    %93 = vector.broadcast %92 : vector<8x1xf32> to vector<8x8xf32>
    %94 = arith.mulf %89, %93 : vector<8x8xf32>
    %95 = arith.truncf %94 : vector<8x8xf32> to vector<8x8xbf16>
    %cst_29 = arith.constant dense<0.000000e+00> : vector<8x8xf32>
    %96 = tpu.matmul %95, %83, %cst_29 {dimension_numbers = #tpu.dot_dimension_numbers<[1], [0], [0], [1], [0, 0, 1, 1], [], []>} : vector<8x8xbf16>, vector<8x8xbf16>, vector<8x8xf32> -> vector<8x8xf32>
    %97 = arith.truncf %96 : vector<8x8xf32> to vector<8x8xbf16>
    %c0_30 = arith.constant 0 : index
    %c24 = arith.constant 24 : index
    %98 = vector.load %arg9[%c0_30, %c24] : memref<8x32xbf16, #tpu.memory_space<vmem>>, vector<8x8xbf16>
    tpu.vector_store %arg9[%c0_30, %c24], %97 {strides = array<i32>} : memref<8x32xbf16, #tpu.memory_space<vmem>>, vector<8x8xbf16>,
    %c0_31 = arith.constant 0 : index
    %c0_32 = arith.constant 0 : index
    %99 = vector.load %arg9[%c0_31, %c0_32] : memref<8x32xbf16, #tpu.memory_space<vmem>>, vector<8x32xbf16>
    %c0_33 = arith.constant 0 : index
    %c0_34 = arith.constant 0 : index
    %100 = vector.load %arg4[%c0_33, %c0_34] : memref<32x32xbf16, #tpu.memory_space<vmem>>, vector<32x32xbf16>
    %cst_35 = arith.constant dense<0.000000e+00> : vector<8x32xf32>
    %101 = tpu.matmul %99, %100, %cst_35 {dimension_numbers = #tpu.dot_dimension_numbers<[1], [0], [0], [1], [0, 0, 1, 1], [], []>} : vector<8x32xbf16>, vector<32x32xbf16>, vector<8x32xf32> -> vector<8x32xf32>
    %c0_36 = arith.constant 0 : index
    %c0_37 = arith.constant 0 : index
    %102 = vector.load %arg5[%c0_36, %c0_37] : memref<1x32xf32, #tpu.memory_space<vmem>>, vector<1x32xf32>
    %103 = vector.broadcast %102 : vector<1x32xf32> to vector<8x32xf32>
    %104 = arith.addf %101, %103 : vector<8x32xf32>
    %105 = arith.extf %1 : vector<8x32xbf16> to vector<8x32xf32>
    %106 = arith.addf %104, %105 : vector<8x32xf32>
    %cst_38 = arith.constant dense<0.000000e+00> : vector<8xf32>
    %107 = vector.multi_reduction <add>, %106, %cst_38 [1] : vector<8x32xf32> to vector<8xf32>
    %108 = vector.shape_cast %107 : vector<8xf32> to vector<8x1xf32>
    %cst_39 = arith.constant 3.200000e+01 : f32
    %109 = vector.broadcast %cst_39 : f32 to vector<8x1xf32>
    %110 = arith.divf %108, %109 : vector<8x1xf32>
    %111 = vector.broadcast %110 : vector<8x1xf32> to vector<8x32xf32>
    %112 = arith.subf %106, %111 : vector<8x32xf32>
    %113 = arith.mulf %112, %112 : vector<8x32xf32>
    %cst_40 = arith.constant dense<0.000000e+00> : vector<8xf32>
    %114 = vector.multi_reduction <add>, %113, %cst_40 [1] : vector<8x32xf32> to vector<8xf32>
    %115 = vector.shape_cast %114 : vector<8xf32> to vector<8x1xf32>
    %cst_41 = arith.constant 3.200000e+01 : f32
    %116 = vector.broadcast %cst_41 : f32 to vector<8x1xf32>
    %117 = arith.divf %115, %116 : vector<8x1xf32>
    %118 = vector.broadcast %110 : vector<8x1xf32> to vector<8x32xf32>
    %119 = arith.subf %106, %118 : vector<8x32xf32>
    %cst_42 = arith.constant 9.99999996E-13 : f32
    %120 = vector.broadcast %cst_42 : f32 to vector<8x1xf32>
    %121 = arith.addf %117, %120 : vector<8x1xf32>
    %122 = math.rsqrt %121 : vector<8x1xf32>
    %123 = vector.broadcast %122 : vector<8x1xf32> to vector<8x32xf32>
    %124 = arith.mulf %119, %123 : vector<8x32xf32>
    %c0_43 = arith.constant 0 : index
    %c0_44 = arith.constant 0 : index
    %125 = vector.load %arg6[%c0_43, %c0_44] : memref<1x32xf32, #tpu.memory_space<vmem>>, vector<1x32xf32>
    %126 = vector.broadcast %125 : vector<1x32xf32> to vector<8x32xf32>
    %127 = arith.mulf %124, %126 : vector<8x32xf32>
    %c0_45 = arith.constant 0 : index
    %c0_46 = arith.constant 0 : index
    %128 = vector.load %arg7[%c0_45, %c0_46] : memref<1x32xf32, #tpu.memory_space<vmem>>, vector<1x32xf32>
    %129 = vector.broadcast %128 : vector<1x32xf32> to vector<8x32xf32>
    %130 = arith.addf %127, %129 : vector<8x32xf32>
    %131 = arith.truncf %130 : vector<8x32xf32> to vector<8x32xbf16>
    %c0_47 = arith.constant 0 : index
    %c0_48 = arith.constant 0 : index
    %c0_49 = arith.constant 0 : index
    %132 = vector.load %arg8[%c0_47, %c0_48, %c0_49] : memref<1x8x32xbf16, #tpu.memory_space<vmem>>, vector<1x8x32xbf16>
    %133 = vector.shape_cast %132 : vector<1x8x32xbf16> to vector<8x32xbf16>
    %134 = vector.shape_cast %131 : vector<8x32xbf16> to vector<1x8x32xbf16>
    tpu.vector_store %arg8[%c0_47, %c0_48, %c0_49], %134 {strides = array<i32>} : memref<1x8x32xbf16, #tpu.memory_space<vmem>>, vector<1x8x32xbf16>,
    return
  }
  func.func @transform_0(%arg0: i32) -> (i32, i32, i32) {
    %c0_i32 = arith.constant 0 : i32
    %c0_i32_0 = arith.constant 0 : i32
    %c0_i32_1 = arith.constant 0 : i32
    return %arg0, %c0_i32, %c0_i32_0 : i32, i32, i32
  }
  func.func @transform_1(%arg0: i32) -> (i32, i32) {
    %c0_i32 = arith.constant 0 : i32
    %c0_i32_0 = arith.constant 0 : i32
    %c0_i32_1 = arith.constant 0 : i32
    return %c0_i32, %c0_i32_0 : i32, i32
  }
  func.func @transform_2(%arg0: i32) -> (i32, i32) {
    %c0_i32 = arith.constant 0 : i32
    %c0_i32_0 = arith.constant 0 : i32
    %c0_i32_1 = arith.constant 0 : i32
    return %c0_i32, %c0_i32_0 : i32, i32
  }
  func.func @transform_3(%arg0: i32) -> (i32, i32) {
    %c0_i32 = arith.constant 0 : i32
    %c0_i32_0 = arith.constant 0 : i32
    %c0_i32_1 = arith.constant 0 : i32
    return %c0_i32, %c0_i32_0 : i32, i32
  }
  func.func @transform_4(%arg0: i32) -> (i32, i32) {
    %c0_i32 = arith.constant 0 : i32
    %c0_i32_0 = arith.constant 0 : i32
    %c0_i32_1 = arith.constant 0 : i32
    return %c0_i32, %c0_i32_0 : i32, i32
  }
  func.func @transform_5(%arg0: i32) -> (i32, i32) {
    %c0_i32 = arith.constant 0 : i32
    %c0_i32_0 = arith.constant 0 : i32
    %c0_i32_1 = arith.constant 0 : i32
    return %c0_i32, %c0_i32_0 : i32, i32
  }
  func.func @transform_6(%arg0: i32) -> (i32, i32) {
    %c0_i32 = arith.constant 0 : i32
    %c0_i32_0 = arith.constant 0 : i32
    %c0_i32_1 = arith.constant 0 : i32
    return %c0_i32, %c0_i32_0 : i32, i32
  }
  func.func @transform_7(%arg0: i32) -> (i32, i32, i32) {
    %c0_i32 = arith.constant 0 : i32
    %c0_i32_0 = arith.constant 0 : i32
    %c0_i32_1 = arith.constant 0 : i32
    return %arg0, %c0_i32, %c0_i32_0 : i32, i32, i32
  }
}

module attributes {stable_mosaic.version = 11 : i64} {
  func.func @_linear_kernel(%arg0: i32, %arg1: i32, %arg2: memref<2x32xbf16, #tpu.memory_space<vmem>>, %arg3: memref<32x32xbf16, #tpu.memory_space<vmem>>, %arg4: memref<1x32xf32, #tpu.memory_space<vmem>>, %arg5: memref<2x32xf32, #tpu.memory_space<vmem>>) attributes {dimension_semantics = [#tpu.dimension_semantics<parallel>, #tpu.dimension_semantics<parallel>], iteration_bounds = array<i64: 1, 1>, scalar_prefetch = 0 : i64, scratch_operands = 0 : i64, tpu.core_type = #tpu.core_type<tc>, window_params = [{transform_indices = @transform_0, window_bounds = array<i64: 2, 32>}, {transform_indices = @transform_1, window_bounds = array<i64: 32, 32>}, {transform_indices = @transform_2, window_bounds = array<i64: 1, 32>}, {transform_indices = @transform_3, window_bounds = array<i64: 2, 32>}]} {
    %c0 = arith.constant 0 : index
    %c0_0 = arith.constant 0 : index
    %0 = vector.load %arg2[%c0, %c0_0] : memref<2x32xbf16, #tpu.memory_space<vmem>>, vector<2x32xbf16>
    %c0_1 = arith.constant 0 : index
    %c0_2 = arith.constant 0 : index
    %1 = vector.load %arg3[%c0_1, %c0_2] : memref<32x32xbf16, #tpu.memory_space<vmem>>, vector<32x32xbf16>
    %cst = arith.constant dense<0.000000e+00> : vector<2x32xf32>
    %2 = tpu.matmul %0, %1, %cst {dimension_numbers = #tpu.dot_dimension_numbers<[1], [0], [0], [1], [0, 0, 1, 1], [], []>} : vector<2x32xbf16>, vector<32x32xbf16>, vector<2x32xf32> -> vector<2x32xf32>
    %c0_3 = arith.constant 0 : index
    %c0_4 = arith.constant 0 : index
    %3 = vector.load %arg4[%c0_3, %c0_4] : memref<1x32xf32, #tpu.memory_space<vmem>>, vector<1x32xf32>
    %4 = vector.broadcast %3 : vector<1x32xf32> to vector<2x32xf32>
    %5 = arith.addf %2, %4 : vector<2x32xf32>
    %c0_5 = arith.constant 0 : index
    %c0_6 = arith.constant 0 : index
    %6 = vector.load %arg5[%c0_5, %c0_6] : memref<2x32xf32, #tpu.memory_space<vmem>>, vector<2x32xf32>
    tpu.vector_store %arg5[%c0_5, %c0_6], %5 {strides = array<i32>} : memref<2x32xf32, #tpu.memory_space<vmem>>, vector<2x32xf32>,
    return
  }
  func.func @transform_0(%arg0: i32, %arg1: i32) -> (i32, i32) {
    %c0_i32 = arith.constant 0 : i32
    %c0_i32_0 = arith.constant 0 : i32
    return %arg0, %c0_i32 : i32, i32
  }
  func.func @transform_1(%arg0: i32, %arg1: i32) -> (i32, i32) {
    %c0_i32 = arith.constant 0 : i32
    %c0_i32_0 = arith.constant 0 : i32
    return %c0_i32, %arg1 : i32, i32
  }
  func.func @transform_2(%arg0: i32, %arg1: i32) -> (i32, i32) {
    %c0_i32 = arith.constant 0 : i32
    %c0_i32_0 = arith.constant 0 : i32
    return %c0_i32, %arg1 : i32, i32
  }
  func.func @transform_3(%arg0: i32, %arg1: i32) -> (i32, i32) {
    %c0_i32 = arith.constant 0 : i32
    return %arg0, %arg1 : i32, i32
  }
}

</mosaic_0001>

<bundles_post_ra>
// kernel: e5_small_forward.11
= control target key start
LH: loop header
LB: loop body
LE: loop exit
PB: predicated region body
PF: predicated region fallthrough
CT: control target
= control target key end

     0   :  { %v142_v1 = vmov 0.0   ;;  %vm143_vm0 = vmmov 0   ;;  %s180_s0 = inlined_call_operand.vmem [shape: bf16[2,32], index: 0, kind: input, shape index: {}]   ;;  %s181_s1 = inlined_call_operand.vmem [shape: bf16[32,32], index: 1, kind: input, shape index: {}]   ;;  %s182_s2 = inlined_call_operand.vmem [shape: f32[1,32], index: 2, kind: input, shape index: {}]   ;;  %s183_s3 = inlined_call_operand.hbm [shape: f32[2,32], index: 3, kind: output, shape index: {}]  }
   0x1   :  { %v118_v0 = vld [vmem:[%s181_s1 + $0x8] sm:$0xff]   ;;  %107 = vmatprep.subr.bf16.mxu0 %v142_v1  ;;  %v119_v2 = vld [vmem:[%s181_s1] sm:$0xff]   ;;  %111 = vmatprep.mubr.msk.bf16.mxu0 %vm143_vm0, %v142_v1 }
   0x2   :  { %108 = vmatpush3.bf16.msra.mxu0 %v118_v0 }
   0x3   :  { %109 = vmatprep.subr.bf16.mxu0 %v142_v1 }
   0x4   :  { %8 = vsyncpa [#allocation3], 0  ;;  %v16_v3 = vld [vmem:[%s180_s0] sm:$0x1]  ;;  %vm40_vm1 = vcmask 261120   ;;  %s144_s20 = smov [#allocation2]  }
   0x5   :  { %v100_v4 = vld [vmem:[%s182_s2] ss:$0 sm:$0xff]  ;;  %s92_s21 = sshll.u32 %s144_s20, 4  ;;  %vm84_vm2 = vcmask 254976   ;;  %s93_s21 = int_to_ptr.vmem [resolvable:$true] %s92_s21 }
   0x6   :  { %110 = vmatpush3.bf16.msra.mxu0 %v119_v2  ;;  %s120_s1 = scalar_lea.vmem %s93_s21, 32  ;;  %p125_p1 = scmp.lt.s32.totalorder %s93_s21, %s93_s21 }
   0x7   :  { %p121_p0 = scmp.ne.s32.totalorder %s93_s21, %s120_s1  ;;  %p126_p2 = scmp.lt.s32.totalorder %s120_s1, %s120_s1 }
   0x9   :  { %112 = vmatmul.mubr.msk.bf16.vlgmr.msra.gmra.mxu0 %vm40_vm1, %v16_v3  ;;  %p127_p3 = por %p126_p2, %p125_p1 }
   0xb   :  { %p128_p4 = pnand %p127_p3, %p121_p0 }
  0xc9   :  { %v78_v5 = vpop.f32.mrf.mxu0 }
  0xca   :  { %v79_v6 = vadd.f32 %v100_v4, %v78_v5 }
  0xcb   :  { %v113_v7 = vpop.f32.mrf.mxu0 }
  0xcc   :  { %85 = vst.msk [vmem:[#allocation2] sm:$0x3] %vm84_vm2, %v79_v6 }
  0xcd   :  { %v81_v8 = vpop.f32.mrf.mxu0 }
  0xce   :  { %131 = shalt.err (!%p128_p4)
}
  0xcf   :  { %95 = dma.vmem_to_hbm [thread:$0]  %s93_s21, 32, %s183_s3, [#allocation3]   ;;  %v114_v9 = vpop.f32.mrf.mxu0 }
  0xd0   :  { %140 = dma.done.wait [#allocation3], 32  }
  0xd1   :  { %141 = vsyncadd [#allocation3], 4294967264 }
  0xd2   :  { %99 = vsyncpa [#allocation3], 1 }

// kernel: e5_small_forward.6
= control target key start
LH: loop header
LB: loop body
LE: loop exit
PB: predicated region body
PF: predicated region fallthrough
CT: control target
= control target key end

     0   :  { %vm23_vm0 = vcmask 261120   ;;  %vm77_vm1 = vcmask 257024   ;;  %s147_s0 = inlined_call_operand.vmem [shape: f32[16,32], index: 0, kind: input, shape index: {}]   ;;  %s148_s1 = inlined_call_operand.vmem [shape: f32[16,32], index: 1, kind: input, shape index: {}]   ;;  %s149_s2 = inlined_call_operand.vmem [shape: f32[1,32], index: 2, kind: input, shape index: {}]   ;;  %s150_s3 = inlined_call_operand.vmem [shape: f32[1,32], index: 3, kind: input, shape index: {}]   ;;  %s151_s4 = inlined_call_operand.vmem [shape: bf16[16,32], index: 4, kind: output, shape index: {}]  }
   0x1   :  { %v17_v0 = vld [vmem:[%s147_s0] sm:$0xff]  ;;  %v18_v2 = vld [vmem:[%s147_s0 + $0x8] sm:$0xff] }
   0x2   :  { %v19_v1 = vld [vmem:[%s148_s1] sm:$0xff]  ;;  %v20_v4 = vld [vmem:[%s148_s1 + $0x8] sm:$0xff] }
   0x3   :  { %v21_v3 = vadd.f32 %v19_v1, %v17_v0  ;;  %v22_v5 = vadd.f32 %v20_v4, %v18_v2  ;;  %v84_v25 = vld [vmem:[%s149_s2] ss:$0 sm:$0xff] }
   0x4   :  { %v85_v27 = vld [vmem:[%s150_s3] ss:$0 sm:$0xff] }
   0x5   :  { %v24_v6 = vsel %vm23_vm0, %v21_v3, 0.0  ;;  %v27_v7 = vsel %vm23_vm0, %v22_v5, 0.0 }
   0x6   :  { %25 = vadd.xlane.f32.xlu0 %v24_v6 }
   0xa   :  { %28 = vadd.xlane.f32.xlu0 %v27_v7 }
  0x8f   :  { %v26_v8 = vpop.xlane.xlu0 %25 }
  0x90   :  { %v31_v9 = vmul.f32 0.03125, %v26_v8 }
  0x92   :  { %v33_v10 = vsub.f32 %v21_v3, %v31_v9 }
  0x93   :  { %v29_v11 = vpop.xlane.xlu0 %28 }
  0x94   :  { %v32_v12 = vmul.f32 0.03125, %v29_v11  ;;  %v35_v13 = vmul.f32 %v33_v10, %v33_v10 }
  0x96   :  { %v34_v14 = vsub.f32 %v22_v5, %v32_v12  ;;  %v37_v15 = vsel %vm23_vm0, %v35_v13, 0.0 }
  0x97   :  { %38 = vadd.xlane.f32.xlu1 %v37_v15 }
  0x98   :  { %v36_v16 = vmul.f32 %v34_v14, %v34_v14 }
  0x9a   :  { %v40_v17 = vsel %vm23_vm0, %v36_v16, 0.0 }
  0x9b   :  { %41 = vadd.xlane.f32.xlu1 %v40_v17 }
 0x120   :  { %v39_v18 = vpop.xlane.xlu1 %38 }
 0x121   :  { %v43_v19 = vmul.f32 0.03125, %v39_v18 }
 0x123   :  { %v45_v20 = vadd.f32 1e-12, %v43_v19 }
 0x124   :  { %v42_v21 = vpop.xlane.xlu1 %41 }
 0x125   :  { %90 = vrsqrt.f32 %v45_v20  ;;  %v44_v22 = vmul.f32 0.03125, %v42_v21 }
 0x127   :  { %v46_v23 = vadd.f32 1e-12, %v44_v22 }
 0x129   :  { %92 = vrsqrt.f32 %v46_v23 }
 0x132   :  { %v91_v24 = vpop.eup %90 }
 0x133   :  { %v49_v26 = vmul.f32 %v91_v24, %v33_v10 }
 0x135   :  { %v58_v28 = vmul.f32 %v84_v25, %v49_v26 }
 0x136   :  { %v93_v29 = vpop.eup %92 }
 0x137   :  { %v67_v30 = vadd.f32 %v85_v27, %v58_v28  ;;  %v50_v31 = vmul.f32 %v93_v29, %v34_v14 }
 0x139   :  { %v88_v32 = vpack.c.bf16 %v67_v30, %v67_v30  ;;  %v59_v33 = vmul.f32 %v84_v25, %v50_v31 }
 0x13b   :  { %78 = vst.msk [vmem:[%s151_s4] sm:$0xf] %vm77_vm1, %v88_v32  ;;  %v68_v34 = vadd.f32 %v85_v27, %v59_v33 }
 0x13d   :  { %v89_v35 = vpack.c.bf16 %v68_v34, %v68_v34 }
 0x13f   :  { %79 = vst.msk [vmem:[%s151_s4 + $0x4] sm:$0xf] %vm77_vm1, %v89_v35 }

// kernel: e5_small_forward.8
= control target key start
LH: loop header
LB: loop body
LE: loop exit
PB: predicated region body
PF: predicated region fallthrough
CT: control target
= control target key end

     0   :  { %v332_v0 = vmov 0.0   ;;  %vm333_vm0 = vmmov 0   ;;  %vm57_vm1 = vcmask 261120   ;;  %vm160_vm2 = vcmask 523264   ;;  %s418_s1 = inlined_call_operand.vmem [shape: bf16[32,64], index: 1, kind: input, shape index: {}]   ;;  %s419_s0 = inlined_call_operand.vmem [shape: bf16[16,32], index: 0, kind: input, shape index: {}]   ;;  %s420_s3 = inlined_call_operand.vmem [shape: bf16[64,32], index: 3, kind: input, shape index: {}]   ;;  %s421_s2 = inlined_call_operand.vmem [shape: f32[1,64], index: 2, kind: input, shape index: {}]   ;;  %s422_s4 = inlined_call_operand.vmem [shape: f32[1,32], index: 4, kind: input, shape index: {}]   ;;  %s423_s5 = inlined_call_operand.vmem [shape: f32[1,32], index: 5, kind: input, shape index: {}]   ;;  %s424_s6 = inlined_call_operand.vmem [shape: f32[1,32], index: 6, kind: input, shape index: {}]   ;;  %s425_s7 = inlined_call_operand.vmem [shape: bf16[16,32], index: 7, kind: output, shape index: {}]  }
   0x1   :  { %294 = vmatprep.subr.bf16.mxu0 %v332_v0  ;;  %v316_v1 = vld [vmem:[%s418_s1 + $0x8] sm:$0xff]   ;;  %298 = vmatprep.mubr.msk.bf16.mxu0 %vm333_vm0, %v332_v0  ;;  %v317_v2 = vld [vmem:[%s418_s1] sm:$0xff]   ;;  %v319_v4 = vld [vmem:[%s420_s3 + $0x18] sm:$0xff]   ;;  %vm262_vm3 = vcmask 257024  }
   0x2   :  { %302 = vmatprep.subr.bf16.mxu1 %v332_v0  ;;  %310 = vmatprep.mubr.msk.bf16.mxu1 %vm333_vm0, %v332_v0  ;;  %v27_v3 = vld [vmem:[%s419_s0] sm:$0xff]   ;;  %v320_v5 = vld [vmem:[%s420_s3 + $0x10] sm:$0xff]   ;;  %v321_v6 = vld [vmem:[%s420_s3 + $0x8] sm:$0xff]  }
   0x3   :  { %295 = vmatpush3.bf16.msra.mxu0 %v316_v1  ;;  %303 = vmatpush3.bf16.msra.mxu1 %v319_v4  ;;  %v322_v7 = vld [vmem:[%s420_s3] sm:$0xff]   ;;  %v205_v35 = vunpack.c.l.bf16 %v27_v3  ;;  %v206_v40 = vunpack.c.h.bf16 %v27_v3 }
   0x4   :  { %296 = vmatprep.subr.bf16.mxu0 %v332_v0  ;;  %304 = vmatprep.subr.bf16.mxu1 %v332_v0  ;;  %v269_v8 = vld [vmem:[%s421_s2] ss:$0 sm:$0xff] }
   0x5   :  { %v274_v34 = vld [vmem:[%s422_s4] ss:$0 sm:$0xff] }
   0x7   :  { %297 = vmatpush3.bf16.msra.mxu0 %v317_v2  ;;  %305 = vmatpush3.bf16.msra.mxu1 %v320_v5  ;;  %v281_v2 = vld [vmem:[%s424_s6] ss:$0 sm:$0xff] }
   0x8   :  { %306 = vmatprep.subr.bf16.mxu1 %v332_v0 }
   0xa   :  { %299 = vmatmul.mubr.msk.bf16.vlgmr.msra.gmra.mxu0 %vm57_vm1, %v27_v3 }
   0xb   :  { %307 = vmatpush3.bf16.msra.mxu1 %v321_v6 }
   0xc   :  { %308 = vmatprep.subr.bf16.mxu1 %v332_v0  ;;  %v280_v0 = vld [vmem:[%s423_s5] ss:$0 sm:$0xff] }
   0xf   :  { %309 = vmatpush3.bf16.msra.mxu1 %v322_v7 }
  0xca   :  { %v95_v9 = vpop.f32.mrf.mxu0 }
  0xcb   :  { %v96_v10 = vadd.f32 %v269_v8, %v95_v9 }
  0xcc   :  { %v300_v11 = vpop.f32.mrf.mxu0 }
  0xcd   :  { %v102_v12 = vmul.f32 %v96_v10, %v96_v10 }
  0xce   :  { %v98_v13 = vpop.f32.mrf.mxu0 }
  0xcf   :  { %v104_v14 = vmul.f32 %v102_v12, %v96_v10  ;;  %v99_v15 = vadd.f32 %v269_v8, %v98_v13 }
  0xd0   :  { %v301_v16 = vpop.f32.mrf.mxu0 }
  0xd1   :  { %v106_v17 = vmul.f32 0.044715, %v104_v14  ;;  %v103_v18 = vmul.f32 %v99_v15, %v99_v15 }
  0xd3   :  { %v108_v19 = vadd.f32 %v106_v17, %v96_v10  ;;  %v105_v20 = vmul.f32 %v103_v18, %v99_v15 }
  0xd5   :  { %v110_v21 = vmul.f32 0.7978846, %v108_v19  ;;  %v107_v22 = vmul.f32 0.044715, %v105_v20 }
  0xd7   :  { %324 = vtanh.f32 %v110_v21  ;;  %v109_v23 = vadd.f32 %v107_v22, %v99_v15 }
  0xd9   :  { %v111_v24 = vmul.f32 0.7978846, %v109_v23 }
  0xdb   :  { %326 = vtanh.f32 %v111_v24 }
  0xe4   :  { %v325_v25 = vpop.eup %324 }
  0xe5   :  { %v114_v26 = vadd.f32 1.0, %v325_v25 }
  0xe7   :  { %v116_v28 = vmul.f32 0.5, %v114_v26 }
  0xe8   :  { %v327_v27 = vpop.eup %326 }
  0xe9   :  { %v115_v29 = vadd.f32 1.0, %v327_v27  ;;  %v118_v31 = vmul.f32 %v116_v28, %v96_v10 }
  0xeb   :  { %v117_v30 = vmul.f32 0.5, %v115_v29 }
  0xed   :  { %v119_v32 = vmul.f32 %v117_v30, %v99_v15 }
  0xef   :  { %v120_v33 = vpack.c.bf16 %v119_v32, %v118_v31 }
  0xf1   :  { %311 = vmatmul.mubr.msk.bf16.vlgmr.msra.gmra.mxu1 %vm160_vm2, %v120_v33 }
 0x1b1   :  { %v198_v36 = vpop.f32.mrf.mxu1 }
 0x1b2   :  { %v199_v37 = vadd.f32 %v274_v34, %v198_v36 }
 0x1b3   :  { %v312_v38 = vpop.f32.mrf.mxu1 }
 0x1b4   :  { %v207_v39 = vadd.f32 %v205_v35, %v199_v37 }
 0x1b5   :  { %v201_v41 = vpop.f32.mrf.mxu1 }
 0x1b6   :  { %v202_v42 = vadd.f32 %v274_v34, %v201_v41  ;;  %v209_v43 = vsel %vm57_vm1, %v207_v39, 0.0 }
 0x1b7   :  { %210 = vadd.xlane.f32.xlu0 %v209_v43  ;;  %v313_v44 = vpop.f32.mrf.mxu1 }
 0x1b8   :  { %v208_v45 = vadd.f32 %v206_v40, %v202_v42 }
 0x1ba   :  { %v212_v46 = vsel %vm57_vm1, %v208_v45, 0.0 }
 0x1bb   :  { %213 = vadd.xlane.f32.xlu0 %v212_v46 }
 0x240   :  { %v211_v47 = vpop.xlane.xlu0 %210 }
 0x241   :  { %v216_v48 = vmul.f32 0.03125, %v211_v47 }
 0x243   :  { %v218_v49 = vsub.f32 %v207_v39, %v216_v48 }
 0x244   :  { %v214_v50 = vpop.xlane.xlu0 %213 }
 0x245   :  { %v217_v51 = vmul.f32 0.03125, %v214_v50  ;;  %v220_v52 = vmul.f32 %v218_v49, %v218_v49 }
 0x247   :  { %v219_v53 = vsub.f32 %v208_v45, %v217_v51  ;;  %v222_v54 = vsel %vm57_vm1, %v220_v52, 0.0 }
 0x248   :  { %223 = vadd.xlane.f32.xlu1 %v222_v54 }
 0x249   :  { %v221_v55 = vmul.f32 %v219_v53, %v219_v53 }
 0x24b   :  { %v225_v56 = vsel %vm57_vm1, %v221_v55, 0.0 }
 0x24c   :  { %226 = vadd.xlane.f32.xlu1 %v225_v56 }
 0x2d1   :  { %v224_v57 = vpop.xlane.xlu1 %223 }
 0x2d2   :  { %v228_v58 = vmul.f32 0.03125, %v224_v57 }
 0x2d4   :  { %v230_v59 = vadd.f32 1e-12, %v228_v58 }
 0x2d5   :  { %v227_v60 = vpop.xlane.xlu1 %226 }
 0x2d6   :  { %328 = vrsqrt.f32 %v230_v59  ;;  %v229_v61 = vmul.f32 0.03125, %v227_v60 }
 0x2d8   :  { %v231_v62 = vadd.f32 1e-12, %v229_v61 }
 0x2da   :  { %330 = vrsqrt.f32 %v231_v62 }
 0x2e3   :  { %v329_v63 = vpop.eup %328 }
 0x2e4   :  { %v234_v1 = vmul.f32 %v329_v63, %v218_v49 }
 0x2e6   :  { %v243_v3 = vmul.f32 %v280_v0, %v234_v1 }
 0x2e7   :  { %v331_v4 = vpop.eup %330 }
 0x2e8   :  { %v252_v5 = vadd.f32 %v281_v2, %v243_v3  ;;  %v235_v6 = vmul.f32 %v331_v4, %v219_v53 }
 0x2ea   :  { %v284_v7 = vpack.c.bf16 %v252_v5, %v252_v5  ;;  %v244_v8 = vmul.f32 %v280_v0, %v235_v6 }
 0x2ec   :  { %263 = vst.msk [vmem:[%s425_s7] sm:$0xf] %vm262_vm3, %v284_v7  ;;  %v253_v9 = vadd.f32 %v281_v2, %v244_v8 }
 0x2ee   :  { %v285_v10 = vpack.c.bf16 %v253_v9, %v253_v9 }
 0x2f0   :  { %264 = vst.msk [vmem:[%s425_s7 + $0x4] sm:$0xf] %vm262_vm3, %v285_v10 }

// kernel: e5_small_forward.7
= control target key start
LH: loop header
LB: loop body
LE: loop exit
PB: predicated region body
PF: predicated region fallthrough
CT: control target
= control target key end

     0   :  { %s1202_s24 = smov 0   ;;  %s1324_s0 = inlined_call_operand.vmem [shape: bf16[2,8,32], index: 0, kind: input, shape index: {}]   ;;  %s1325_s1 = inlined_call_operand.vmem [shape: bf16[32,96], index: 1, kind: input, shape index: {}]   ;;  %s1326_s2 = inlined_call_operand.vmem [shape: f32[1,96], index: 2, kind: input, shape index: {}]   ;;  %s1327_s3 = inlined_call_operand.vmem [shape: bf16[32,32], index: 3, kind: input, shape index: {}]   ;;  %s1328_s4 = inlined_call_operand.vmem [shape: f32[1,32], index: 4, kind: input, shape index: {}]   ;;  %s1329_s5 = inlined_call_operand.vmem [shape: f32[1,32], index: 5, kind: input, shape index: {}]   ;;  %s1330_s6 = inlined_call_operand.vmem [shape: f32[1,32], index: 6, kind: input, shape index: {}]   ;;  %s1331_s7 = inlined_call_operand.vmem [shape: bf16[2,8,32], index: 7, kind: output, shape index: {}]  }
   0x1 LB: > { %s973_s25 = sadd.s32 4294967295, %s1144_s24   ;;  %p977_p0 = scmp.ge.s32.totalorder %s1144_s24, 1  ;;  %s1144_s24 = sphi %s1202_s24, %s17_s24  }
   0x2   : > { %p236_p1 = scmp.lt.s32.totalorder %s1144_s24, 3 }
   0x4   : > { %p237_p2 = pnand %p977_p0, %p236_p1 }
   0x5   : > { %p266_p3 = scmp.lt.s32.totalorder (!%p237_p2), %s973_s25, 1  ;;  %s1148_s13 = smov (!%p237_p2), 120  }
   0x6   : > { %240 = sbr.rel (%p237_p2) target bundleno = 1734 (0x6c6), region = 48  ;;  %s1149_s14 = smov (!%p237_p2), 104  }
   0x7   : > { %s1150_s15 = smov (!%p237_p2), 96   ;;  %s1151_s16 = smov (!%p237_p2), 72  }
   0x8   : > { %s1152_s17 = smov (!%p237_p2), 80   ;;  %s1153_s18 = smov (!%p237_p2), 48  }
   0x9   : > { %s1154_s19 = smov (!%p237_p2), 56   ;;  %s1155_s20 = smov (!%p237_p2), 88  }
   0xa   : > { %s1156_s21 = smov (!%p237_p2), 112   ;;  %s1157_s22 = smov (!%p237_p2), 40  }
   0xb   : > { %v1116_v0 = vld [vmem:[%s1325_s1 + $0x8] sm:$0xff]   ;;  %v1146_v1 = vmov 0.0   ;;  %v1117_v2 = vld [vmem:[%s1325_s1] sm:$0xff]   ;;  %vm1147_vm0 = vmmov 0   ;;  %s1333_s25 = smov (!%p266_p3, %s973_s25), 1  ;;  %vm299_vm1 = vcmask 261120  }
   0xc   : > { %1028 = vmatprep.subr.bf16.mxu0 %v1146_v1  ;;  %1036 = vmatprep.subr.bf16.mxu1 %v1146_v1  ;;  %s978_s30 = sshll.u32 %s1333_s25, 2  ;;  %v980_v4 = vld [vmem:[%s1326_s2] ss:$0 sm:$0xff]  ;;  %vm349_vm2 = vcmask 64512   ;;  %s1158_s23 = smov 64   ;;  %vm413_vm3 = vcmask 1043456  }
   0xd   : > { %1029 = vmatpush3.bf16.msra.mxu0 %v1116_v0  ;;  %1032 = vmatprep.mubr.msk.bf16.mxu0 %vm1147_vm0, %v1146_v1  ;;  %s269_s10 = scalar_lea.vmem %s1324_s0, %s978_s30  ;;  %vm458_vm4 = vcmask 60416   ;;  %s1159_s26 = smov 8   ;;  %vm578_vm5 = vcmask 126016   ;;  %vm697_vm6 = vcmask 191616   ;;  %vm816_vm7 = vcmask 257216  }
   0xe   : > { %1030 = vmatprep.subr.bf16.mxu0 %v1146_v1  ;;  %1038 = vmatprep.mubr.msk.bf16.mxu1 %vm1147_vm0, %v1146_v1  ;;  %v1232_v3 = vld [vmem:[%s269_s10] sm:$0xf]  ;;  %s1160_s9 = smov 16   ;;  %s1161_s10 = smov 24   ;;  %vm918_vm8 = vcmask 257024  }
  0x11   : > { %1031 = vmatpush3.bf16.msra.mxu0 %v1117_v2 }
  0x12   : > { %1042 = vmatprep.subr.bf16.mxu0 %v1146_v1 }
  0x14   : > { %1033 = vmatmul.mubr.msk.bf16.vlgmr.msra.gmra.mxu0 %vm299_vm1, %v1232_v3 }
  0x15   : > { %1044 = vmatprep.mubr.msk.bf16.mxu0 %vm1147_vm0, %v1146_v1 }
  0xd4   : > { %v337_v5 = vpop.f32.mrf.mxu0 }
  0xd5   : > { %v338_v6 = vadd.f32 %v980_v4, %v337_v5 }
  0xd6   : > { %v1034_v7 = vpop.f32.mrf.mxu0 }
  0xd7   : > { %v343_v8 = vmul.f32 0.35355338, %v338_v6  ;;  %v1241_v9 = vpack.c.bf16 %v338_v6, %v338_v6 }
  0xd8   : > { %v340_v10 = vpop.f32.mrf.mxu0 }
  0xd9   : > { %v344_v11 = vpack.c.bf16 %v343_v8, %v343_v8  ;;  %347 = vrot.lane.b32.xlu0 %v1241_v9, %s1148_s13 }
  0xda   : > { %v1035_v12 = vpop.f32.mrf.mxu0 }
  0xdb   : > { %461 = vrot.lane.b32.xlu1 %v344_v11, %s1149_s14 }
  0xdd   : > { %463 = vrot.lane.b32.xlu0 %v1241_v9, %s1150_s15 }
  0xdf   : > { %582 = vrot.lane.b32.xlu1 %v1241_v9, %s1151_s16 }
  0xe1   : > { %580 = vrot.lane.b32.xlu0 %v344_v11, %s1152_s17 }
  0xe3   : > { %701 = vrot.lane.b32.xlu1 %v1241_v9, %s1153_s18 }
  0xe5   : > { %699 = vrot.lane.b32.xlu0 %v344_v11, %s1154_s19  ;;  %s273_s19 = scalar_lea.vmem %s1331_s7, %s978_s30 }
 0x14b   : > { %v348_v13 = vpop.permute.xlu0 %347 }
 0x14c   : > { %v354_v14 = vsel %vm349_vm2, %v348_v13, 0 }
 0x14d   : > { %1037 = vmatpush3.bf16.xpose.msra.mxu1 %v354_v14  ;;  %v462_v16 = vpop.permute.xlu1 %461 }
 0x14e   : > { %1048 = vmatprep.subr.bf16.mxu1 %v1146_v1 }
 0x14f   : > { %v464_v15 = vpop.permute.xlu0 %463 }
 0x150   : > { %v469_v17 = vsel %vm349_vm2, %v464_v15, 0 }
 0x151   : > { %v583_v18 = vpop.permute.xlu1 %582 }
 0x152   : > { %v588_v19 = vsel %vm349_vm2, %v583_v18, 0 }
 0x153   : > { %v581_v21 = vpop.permute.xlu0 %580 }
 0x154   : > { %1039 = vmatmul.mubr.msk.bf16.vlgmr.msra.gmra.mxu1 %vm349_vm2, %v344_v11 }
 0x155   : > { %1049 = vmatpush3.bf16.xpose.msra.mxu1 %v469_v17  ;;  %1050 = vmatprep.mubr.msk.bf16.mxu1 %vm1147_vm0, %v1146_v1  ;;  %v702_v20 = vpop.permute.xlu1 %701 }
 0x156   : > { %1060 = vmatprep.subr.bf16.mxu1 %v1146_v1  ;;  %v707_v22 = vsel %vm349_vm2, %v702_v20, 0 }
 0x157   : > { %v700_v23 = vpop.permute.xlu0 %699 }
 0x15c   : > { %1051 = vmatmul.mubr.msk.bf16.vlgmr.msra.gmra.mxu1 %vm349_vm2, %v462_v16 }
 0x15d   : > { %1061 = vmatpush3.bf16.xpose.msra.mxu1 %v588_v19  ;;  %1062 = vmatprep.mubr.msk.bf16.mxu1 %vm1147_vm0, %v1146_v1 }
 0x15e   : > { %1072 = vmatprep.subr.bf16.mxu1 %v1146_v1 }
 0x164   : > { %1063 = vmatmul.mubr.msk.bf16.vlgmr.msra.gmra.mxu1 %vm349_vm2, %v581_v21 }
 0x165   : > { %1073 = vmatpush3.bf16.xpose.msra.mxu1 %v707_v22  ;;  %1074 = vmatprep.mubr.msk.bf16.mxu1 %vm1147_vm0, %v1146_v1 }
 0x166   : > { %1084 = vmatprep.subr.bf16.mxu1 %v1146_v1 }
 0x16c   : > { %1075 = vmatmul.mubr.msk.bf16.vlgmr.msra.gmra.mxu1 %vm349_vm2, %v700_v23 }
 0x16d   : > { %1088 = vmatprep.mubr.msk.bf16.mxu1 %vm1147_vm0, %v1146_v1 }
 0x214   : > { %v390_v24 = vpop.f32.mrf.mxu1 }
 0x215   : > { %v396_v25 = vsel %vm349_vm2, %v390_v24, -inf }
 0x216   : > { %397 = vmax.xlane.f32.xlu1 %v396_v25  ;;  %v1040_v26 = vpop.f32.mrf.mxu1 }
 0x218   : > { %v393_v27 = vpop.f32.mrf.mxu1 }
 0x21a   : > { %v1041_v28 = vpop.f32.mrf.mxu1 }
 0x21c   : > { %v505_v29 = vpop.f32.mrf.mxu1 }
 0x21d   : > { %v511_v30 = vsel %vm349_vm2, %v505_v29, -inf }
 0x21e   : > { %512 = vmax.xlane.f32.xlu0 %v511_v30  ;;  %v1052_v31 = vpop.f32.mrf.mxu1 }
 0x220   : > { %v508_v32 = vpop.f32.mrf.mxu1 }
 0x222   : > { %v1053_v33 = vpop.f32.mrf.mxu1 }
 0x224   : > { %v624_v34 = vpop.f32.mrf.mxu1 }
 0x225   : > { %v630_v35 = vsel %vm349_vm2, %v624_v34, -inf }
 0x226   : > { %631 = vmax.xlane.f32.xlu0 %v630_v35  ;;  %v1064_v36 = vpop.f32.mrf.mxu1 }
 0x227   : > { %v1118_v36 = vld [vmem:[%s1327_s3 + $0x8] sm:$0xff]  }
 0x228   : > { %v627_v37 = vpop.f32.mrf.mxu1  ;;  %1085 = vmatpush3.bf16.msra.mxu1 %v1118_v36 }
 0x229   : > { %1086 = vmatprep.subr.bf16.mxu1 %v1146_v1 }
 0x22a   : > { %v1065_v38 = vpop.f32.mrf.mxu1 }
 0x22c   : > { %v743_v39 = vpop.f32.mrf.mxu1 }
 0x22d   : > { %v749_v40 = vsel %vm349_vm2, %v743_v39, -inf }
 0x22e   : > { %750 = vmax.xlane.f32.xlu1 %v749_v40  ;;  %v1076_v41 = vpop.f32.mrf.mxu1 }
 0x230   : > { %v746_v42 = vpop.f32.mrf.mxu1 }
 0x232   : > { %v1077_v43 = vpop.f32.mrf.mxu1 }
 0x29f   : > { %v398_v44 = vpop.xlane.xlu1 %397 }
 0x2a0   : > { %v399_v45 = vsub.f32 %v390_v24, %v398_v44 }
 0x2a2   : > { %v400_v46 = vmul.f32 1.442695, %v399_v45 }
 0x2a4   : > { %1120 = vpow2.f32 %v400_v46 }
 0x2a7   : > { %v513_v47 = vpop.xlane.xlu0 %512 }
 0x2a8   : > { %v514_v48 = vsub.f32 %v505_v29, %v513_v47 }
 0x2aa   : > { %v515_v49 = vmul.f32 1.442695, %v514_v48 }
 0x2ac   : > { %1122 = vpow2.f32 %v515_v49 }
 0x2af   : > { %v632_v50 = vpop.xlane.xlu0 %631 }
 0x2b0   : > { %v633_v51 = vsub.f32 %v624_v34, %v632_v50 }
 0x2b1   : > { %v1121_v52 = vpop.eup %1120 }
 0x2b2   : > { %v634_v53 = vmul.f32 1.442695, %v633_v51  ;;  %v402_v54 = vsel %vm349_vm2, %v1121_v52, 0.0  ;;  %v995_v51 = vld [vmem:[%s1328_s4] ss:$0 sm:$0xff] }
 0x2b3   : > { %403 = vadd.xlane.f32.xlu0 %v402_v54 }
 0x2b4   : > { %1124 = vpow2.f32 %v634_v53 }
 0x2b7   : > { %v751_v59 = vpop.xlane.xlu1 %750 }
 0x2b8   : > { %v752_v60 = vsub.f32 %v743_v39, %v751_v59  ;;  %v1119_v39 = vld [vmem:[%s1327_s3] sm:$0xff]  }
 0x2b9   : > { %v1123_v55 = vpop.eup %1122  ;;  %1087 = vmatpush3.bf16.msra.mxu1 %v1119_v39 }
 0x2ba   : > { %v517_v56 = vsel %vm349_vm2, %v1123_v55, 0.0  ;;  %v753_v61 = vmul.f32 1.442695, %v752_v60 }
 0x2bb   : > { %518 = vadd.xlane.f32.xlu1 %v517_v56 }
 0x2bc   : > { %1126 = vpow2.f32 %v753_v61 }
 0x2c1   : > { %v1125_v57 = vpop.eup %1124 }
 0x2c2   : > { %v636_v58 = vsel %vm349_vm2, %v1125_v57, 0.0 }
 0x2c3   : > { %637 = vadd.xlane.f32.xlu0 %v636_v58 }
 0x2c9   : > { %v1127_v62 = vpop.eup %1126 }
 0x2ca   : > { %v755_v63 = vsel %vm349_vm2, %v1127_v62, 0.0 }
 0x2cc   : > { %523 = vrot.lane.b32.xlu1 %v1241_v9, %s1155_s20 }
 0x2d9   : > { %408 = vrot.lane.b32.xlu0 %v1241_v9, %s1156_s21 }
 0x2dd   : > { %761 = vrot.lane.b32.xlu0 %v1241_v9, %s1157_s22 }
 0x2f0   : > { %756 = vadd.xlane.f32.xlu1 %v755_v63 }
 0x301   : > { %642 = vrot.lane.b32.xlu1 %v1241_v9, %s1158_s23 }
 0x33c   : > { %v404_v0 = vpop.xlane.xlu0 %403 }
 0x33d   : > { %1128 = vrcp.f32 %v404_v0 }
 0x344   : > { %v519_v2 = vpop.xlane.xlu1 %518 }
 0x345   : > { %1130 = vrcp.f32 %v519_v2 }
 0x348   : > { %v524_v10 = vpop.permute.xlu1 %523 }
 0x349   : > { %v529_v13 = vsel %vm413_vm3, %v524_v10, 0 }
 0x34a   : > { %v1129_v4 = vpop.eup %1128 }
 0x34b   : > { %v406_v6 = vmul.f32 %v1129_v4, %v1121_v52  ;;  %v885_v52 = vunpack.c.l.bf16 %v1232_v3 }
 0x34c   : > { %v638_v5 = vpop.xlane.xlu0 %637 }
 0x34d   : > { %v407_v11 = vpack.c.bf16 %v406_v6, %v406_v6  ;;  %1132 = vrcp.f32 %v638_v5  ;;  %v999_v6 = vld [vmem:[%s1329_s5] ss:$0 sm:$0xff] }
 0x350   : > { %v409_v7 = vpop.permute.xlu0 %408 }
 0x351   : > { %v415_v8 = vsel %vm413_vm3, %v409_v7, 0 }
 0x352   : > { %1043 = vmatpush3.bf16.msra.mxu0 %v415_v8  ;;  %v1131_v12 = vpop.eup %1130  ;;  %v1000_v8 = vld [vmem:[%s1330_s6] ss:$0 sm:$0xff] }
 0x353   : > { %1054 = vmatprep.subr.bf16.mxu0 %v1146_v1  ;;  %v521_v9 = vmul.f32 %v1131_v12, %v1123_v55 }
 0x354   : > { %v762_v20 = vpop.permute.xlu0 %761 }
 0x355   : > { %1045 = vmatmul.mubr.msk.bf16.vlgmr.msra.gmra.mxu0 %vm349_vm2, %v407_v11  ;;  %v522_v14 = vpack.c.bf16 %v521_v9, %v521_v9  ;;  %v767_v22 = vsel %vm413_vm3, %v762_v20, 0 }
 0x356   : > { %1055 = vmatpush3.bf16.msra.mxu0 %v529_v13  ;;  %1056 = vmatprep.mubr.msk.bf16.mxu0 %vm1147_vm0, %v1146_v1 }
 0x357   : > { %1066 = vmatprep.subr.bf16.mxu0 %v1146_v1 }
 0x35a   : > { %v1133_v15 = vpop.eup %1132 }
 0x35b   : > { %v640_v17 = vmul.f32 %v1133_v15, %v1125_v57 }
 0x35d   : > { %1057 = vmatmul.mubr.msk.bf16.vlgmr.msra.gmra.mxu0 %vm349_vm2, %v522_v14  ;;  %v641_v21 = vpack.c.bf16 %v640_v17, %v640_v17 }
 0x35e   : > { %1068 = vmatprep.mubr.msk.bf16.mxu0 %vm1147_vm0, %v1146_v1 }
 0x379   : > { %v757_v16 = vpop.xlane.xlu1 %756 }
 0x37a   : > { %1134 = vrcp.f32 %v757_v16 }
 0x37d   : > { %v643_v18 = vpop.permute.xlu1 %642 }
 0x37e   : > { %v648_v19 = vsel %vm413_vm3, %v643_v18, 0 }
 0x37f   : > { %1067 = vmatpush3.bf16.msra.mxu0 %v648_v19 }
 0x380   : > { %1078 = vmatprep.subr.bf16.mxu0 %v1146_v1 }
 0x382   : > { %1069 = vmatmul.mubr.msk.bf16.vlgmr.msra.gmra.mxu0 %vm349_vm2, %v641_v21 }
 0x383   : > { %1079 = vmatpush3.bf16.msra.mxu0 %v767_v22  ;;  %1080 = vmatprep.mubr.msk.bf16.mxu0 %vm1147_vm0, %v1146_v1 }
 0x387   : > { %v1135_v23 = vpop.eup %1134 }
 0x388   : > { %v759_v24 = vmul.f32 %v1135_v23, %v1127_v62 }
 0x38a   : > { %v760_v25 = vpack.c.bf16 %v759_v24, %v759_v24 }
 0x38c   : > { %1081 = vmatmul.mubr.msk.bf16.vlgmr.msra.gmra.mxu0 %vm349_vm2, %v760_v25 }
 0x415   : > { %v451_v26 = vpop.f32.mrf.mxu0 }
 0x416   : > { %v457_v27 = vpack.c.bf16 %v451_v26, %v451_v26 }
 0x417   : > { %v1046_v28 = vpop.f32.mrf.mxu0 }
 0x418   : > { %459 = vst.msk [vmem:[#allocation2] sm:$0xf] %vm458_vm4, %v457_v27 }
 0x419   : > { %v454_v29 = vpop.f32.mrf.mxu0 }
 0x41b   : > { %v1047_v30 = vpop.f32.mrf.mxu0 }
 0x41d   : > { %v565_v31 = vpop.f32.mrf.mxu0 }
 0x41e   : > { %v1003_v32 = vpack.c.bf16 %v565_v31, %v565_v31 }
 0x41f   : > { %v1058_v33 = vpop.f32.mrf.mxu0 }
 0x420   : > { %575 = vrot.lane.b32.xlu1 %v1003_v32, %s1159_s26 }
 0x421   : > { %v568_v34 = vpop.f32.mrf.mxu0 }
 0x423   : > { %v1059_v35 = vpop.f32.mrf.mxu0 }
 0x442   : > { %v684_v37 = vpop.f32.mrf.mxu0 }
 0x443   : > { %v1004_v38 = vpack.c.bf16 %v684_v37, %v684_v37 }
 0x444   : > { %v1070_v40 = vpop.f32.mrf.mxu0 }
 0x445   : > { %694 = vrot.lane.b32.xlu0 %v1004_v38, %s1160_s9 }
 0x446   : > { %v687_v41 = vpop.f32.mrf.mxu0 }
 0x448   : > { %v1071_v42 = vpop.f32.mrf.mxu0 }
 0x44c   : > { %v803_v43 = vpop.f32.mrf.mxu0 }
 0x44d   : > { %v1005_v44 = vpack.c.bf16 %v803_v43, %v803_v43 }
 0x44e   : > { %v1082_v45 = vpop.f32.mrf.mxu0 }
 0x44f   : > { %813 = vrot.lane.b32.xlu1 %v1005_v44, %s1161_s10 }
 0x450   : > { %v806_v46 = vpop.f32.mrf.mxu0 }
 0x452   : > { %v1083_v47 = vpop.f32.mrf.mxu0 }
 0x492   : > { %v576_v48 = vpop.permute.xlu1 %575 }
 0x493   : > { %579 = vst.msk [vmem:[#allocation2] sm:$0xf] %vm578_vm5, %v576_v48 }
 0x4b7   : > { %v695_v49 = vpop.permute.xlu0 %694 }
 0x4b8   : > { %698 = vst.msk [vmem:[#allocation2] sm:$0xf] %vm697_vm6, %v695_v49 }
 0x4c1   : > { %v814_v1 = vpop.permute.xlu1 %813 }
 0x4c2   : > { %817 = vst.msk [vmem:[#allocation2] sm:$0xf] %vm816_vm7, %v814_v1 }
 0x4c9   : > { %v818_v50 = vld [vmem:[#allocation2] sm:$0xf] }
 0x4ca   : > { %1089 = vmatmul.mubr.msk.bf16.vlgmr.msra.gmra.mxu1 %vm299_vm1, %v818_v50 }
 0x58a   : > { %v879_v53 = vpop.f32.mrf.mxu1 }
 0x58b   : > { %v880_v54 = vadd.f32 %v995_v51, %v879_v53 }
 0x58c   : > { %v1090_v55 = vpop.f32.mrf.mxu1 }
 0x58d   : > { %v886_v56 = vadd.f32 %v885_v52, %v880_v54 }
 0x58e   : > { %v882_v57 = vpop.f32.mrf.mxu1 }
 0x58f   : > { %v887_v58 = vsel %vm299_vm1, %v886_v56, 0.0 }
 0x590   : > { %888 = vadd.xlane.f32.xlu0 %v887_v58  ;;  %v1091_v59 = vpop.f32.mrf.mxu1 }
 0x619   : > { %v889_v60 = vpop.xlane.xlu0 %888 }
 0x61a   : > { %v891_v61 = vmul.f32 0.03125, %v889_v60 }
 0x61c   : > { %v892_v62 = vsub.f32 %v886_v56, %v891_v61 }
 0x61e   : > { %v893_v63 = vmul.f32 %v892_v62, %v892_v62 }
 0x620   : > { %v894_v0 = vsel %vm299_vm1, %v893_v63, 0.0 }
 0x621   : > { %895 = vadd.xlane.f32.xlu1 %v894_v0 }
 0x6aa   : > { %v896_v2 = vpop.xlane.xlu1 %895 }
 0x6ab   : > { %v897_v4 = vmul.f32 0.03125, %v896_v2 }
 0x6ad   : > { %v898_v3 = vadd.f32 1e-12, %v897_v4 }
 0x6af   : > { %1136 = vrsqrt.f32 %v898_v3 }
 0x6bc   : > { %v1137_v5 = vpop.eup %1136 }
 0x6bd   : > { %v900_v7 = vmul.f32 %v1137_v5, %v892_v62 }
 0x6bf   : > { %v908_v10 = vmul.f32 %v999_v6, %v900_v7 }
 0x6c1   : > { %v916_v11 = vadd.f32 %v1000_v8, %v908_v10 }
 0x6c3   : > { %v917_v12 = vpack.c.bf16 %v916_v11, %v916_v11 }
 0x6c5   : > { %919 = vst.msk [vmem:[%s273_s19] sm:$0xf] %vm918_vm8, %v917_v12 }
 0x6c6 PF: > { %s17_s24 = sadd.s32 1, %s1144_s24  }
 0x6c7   : > { %p14_p4 = scmp.ge.s32.totalorder %s17_s24, 4  }
 0x6c9   :  { %16 = sbr.rel (!%p14_p4) target bundleno = 1 (0x1), region = 78 }

</bundles_post_ra>
